<compile_context>
chip_gen: v7x
topology: tpu7x:2x2x1
jax: 0.10.0
libtpu: 0.0.40
codegen_flags: <defaults>
</compile_context>

<pallas_src>
import functools

import jax
import jax.numpy as jnp
import numpy as np
from jax import lax
from jax.experimental import pallas as pl
from jax.experimental.pallas import tpu as pltpu

LANE = 128      # vreg lane width
SUBLANE = 8     # f32 vreg sublane count


def _round_up(n, m):
    return ((n + m - 1) // m) * m


def lstm_attn_kernel(tok_ref, t2g_ref, whh_ref, b_ref, wa_ref, ba_ref, sel_ref,
                     out_ref, gx_ref, hs_ref, *, T, Bp, Hp, Vp):
    N = T * Bp

    # ---- Fused embedding lookup + input projection for ALL timesteps:
    # one-hot(tokens) @ (embed @ W_ih^T), bias folded in -> a single MXU matmul.
    lanes = lax.broadcasted_iota(jnp.int32, (N, Vp), 1)
    onehot = (lanes == tok_ref[...]).astype(jnp.float32)               # (N, Vp)
    gx_ref[...] = (jnp.dot(onehot, t2g_ref[...],
                           preferred_element_type=jnp.float32)
                   + b_ref[...])                                        # (N, 4*Hp)

    def step(t, carry):
        h, c = carry                                                    # (Bp, Hp) each
        row = pl.multiple_of(t * Bp, Bp)                                # 8-sublane aligned
        # Only the recurrent matmul remains on the serial critical path; W_hh is read
        # from VMEM inside the loop (hoisting a 64-vreg value would just spill).
        gates = gx_ref[pl.ds(row, Bp), :] + jnp.dot(
            h, whh_ref[...], preferred_element_type=jnp.float32)        # (Bp, 4*Hp)
        # i/f/o pre-activations were pre-scaled by 0.5 at pack time, so one wide tanh
        # covers all four gates: sigmoid(z) = 0.5*tanh(z/2) + 0.5.
        tg = jnp.tanh(gates)
        i = 0.5 * tg[:, 0 * Hp:1 * Hp] + 0.5
        f = 0.5 * tg[:, 1 * Hp:2 * Hp] + 0.5
        g = tg[:, 2 * Hp:3 * Hp]
        o = 0.5 * tg[:, 3 * Hp:4 * Hp] + 0.5
        c_new = f * c + i * g
        h_new = o * jnp.tanh(c_new)
        hs_ref[pl.ds(row, Bp), :] = h_new                               # full-tile store
        return h_new, c_new

    h0 = jnp.zeros((Bp, Hp), jnp.float32)
    c0 = jnp.zeros((Bp, Hp), jnp.float32)
    lax.fori_loop(0, T, step, (h0, c0), unroll=True)

    # ---- Attention pooling, hoisted out of the recurrence (softmax over the batch
    # dim for every timestep; padded batch rows are zeroed by the selector matrix).
    h_all = hs_ref[...]                                                 # (N, Hp)
    score = (jnp.sum(h_all * wa_ref[...], axis=1, keepdims=True)
             + ba_ref[0, 0])                                            # (N, 1)
    # One global shift is enough for stability and cancels in num/den per timestep.
    e = jnp.exp(score - jnp.max(score, axis=0, keepdims=True))          # (N, 1), <= 1
    sel = sel_ref[...]                                                  # (T, N)
    num = jnp.dot(sel, e * h_all, preferred_element_type=jnp.float32)   # (T, Hp)
    den = jnp.dot(sel, e, preferred_element_type=jnp.float32)           # (T, 1)
    out_ref[...] = num / den                                            # exact divide


def pack_params(embed, w_ih, w_hh, b_ih, b_hh, w_attn, b_attn):
    """One-time host-side repack (NOT in the per-call path):
       * hidden dim zero-padded to full 128-lane tiles, one tile per gate
       * embedding folded into the input projection: tok2gate = embed @ W_ih^T
       * b_ih + b_hh folded into one bias row
       * i/f/o gate columns pre-scaled by 0.5 for the in-kernel single-tanh sigmoid
    """
    embed = np.asarray(embed, np.float32)
    w_ih = np.asarray(w_ih, np.float32)
    w_hh = np.asarray(w_hh, np.float32)
    bias = np.asarray(b_ih, np.float32) + np.asarray(b_hh, np.float32)
    w_attn = np.asarray(w_attn, np.float32)
    b_attn = np.asarray(b_attn, np.float32)

    V, H = embed.shape
    Vp = _round_up(V, LANE)
    Hp = _round_up(H, LANE)
    gate_scale = (0.5, 0.5, 1.0, 0.5)           # i, f, g, o

    tok2gate = embed @ w_ih.T                   # (V, 4H)
    whh_t = w_hh.T                              # (H, 4H)

    t2g_p = np.zeros((Vp, 4 * Hp), np.float32)
    whh_p = np.zeros((Hp, 4 * Hp), np.float32)
    b_p = np.zeros((1, 4 * Hp), np.float32)
    for gi, s in enumerate(gate_scale):
        src = slice(gi * H, (gi + 1) * H)
        dst = slice(gi * Hp, gi * Hp + H)
        t2g_p[:V, dst] = s * tok2gate[:, src]
        whh_p[:H, dst] = s * whh_t[:, src]
        b_p[0, dst] = s * bias[src]

    wa_p = np.zeros((1, Hp), np.float32)
    wa_p[0, :H] = w_attn[0]
    ba = b_attn.reshape(1, 1).astype(np.float32)

    return (jnp.asarray(t2g_p), jnp.asarray(whh_p), jnp.asarray(b_p),
            jnp.asarray(wa_p), jnp.asarray(ba))


@jax.jit
def lstm_self_attn(x, params):
    """x: (T, B) int32 tokens.  Returns the lane-padded (T, Hp) output; slice [:, :H]
    at the consumer (keeps the kernel's output store lane-dense and avoids a trailing
    XLA slice in the hot path)."""
    t2g_p, whh_p, b_p, wa_p, ba = params
    T, B = x.shape
    Vp, four_hp = t2g_p.shape
    Hp = four_hp // 4
    Bp = _round_up(B, SUBLANE)
    N = T * Bp

    # Only per-call XLA glue left: pad the (T, B) tokens to full sublane tiles (tiny).
    tok = jnp.pad(x.astype(jnp.int32), ((0, 0), (0, Bp - B))).reshape(N, 1)

    # Batch-selector for the pooling segment-sums (also masks the padded batch rows);
    # built with numpy at trace time -> a compile-time constant, zero runtime cost.
    sel_np = np.zeros((T, N), np.float32)
    for t in range(T):
        sel_np[t, t * Bp:t * Bp + B] = 1.0
    sel = jnp.asarray(sel_np)

    vmem = pl.BlockSpec(memory_space=pltpu.MemorySpace.VMEM)
    smem = pl.BlockSpec(memory_space=pltpu.MemorySpace.SMEM)

    return pl.pallas_call(
        functools.partial(lstm_attn_kernel, T=T, Bp=Bp, Hp=Hp, Vp=Vp),
        out_shape=jax.ShapeDtypeStruct((T, Hp), jnp.float32),
        in_specs=[vmem, vmem, vmem, vmem, vmem, smem, vmem],
        out_specs=vmem,
        scratch_shapes=[pltpu.VMEM((N, 4 * Hp), jnp.float32),   # hoisted gates_x
                        pltpu.VMEM((N, Hp), jnp.float32)],      # per-step h for pooling
    )(tok, t2g_p, whh_p, b_p, wa_p, ba, sel)


def reference(x, embed, w_ih, w_hh, b_ih, b_hh, w_attn, b_attn):
    emb = embed[x]                                                   # (T, B, H)
    T, B, H = emb.shape

    def step(carry, x_t):
        h, c = carry
        gates = x_t @ w_ih.T + b_ih + h @ w_hh.T + b_hh
        i = jax.nn.sigmoid(gates[:, 0:H])
        f = jax.nn.sigmoid(gates[:, H:2 * H])
        g = jnp.tanh(gates[:, 2 * H:3 * H])
        o = jax.nn.sigmoid(gates[:, 3 * H:4 * H])
        c = f * c + i * g
        h = o * jnp.tanh(c)
        return (h, c), h

    init = (jnp.zeros((B, H), jnp.float32), jnp.zeros((B, H), jnp.float32))
    _, ys = lax.scan(step, init, emb)                                # (T, B, H)
    attn = ys @ w_attn.T + b_attn                                    # (T, B, 1)
    score = jax.nn.softmax(attn[:, :, 0], axis=-1)                   # (T, B)
    return jnp.sum(ys * score[:, :, None], axis=1)                   # (T, H)


if __name__ == "__main__":
    V, H, T, B = 50, 32, 8, 4
    key = jax.random.PRNGKey(0)
    ks = jax.random.split(key, 8)
    embed = jax.random.normal(ks[0], (V, H), jnp.float32) * 0.1
    w_ih = jax.random.normal(ks[1], (4 * H, H), jnp.float32) * 0.1
    w_hh = jax.random.normal(ks[2], (4 * H, H), jnp.float32) * 0.1
    b_ih = jax.random.normal(ks[3], (4 * H,), jnp.float32) * 0.1
    b_hh = jax.random.normal(ks[4], (4 * H,), jnp.float32) * 0.1
    w_attn = jax.random.normal(ks[5], (1, H), jnp.float32) * 0.1
    b_attn = jax.random.normal(ks[6], (1,), jnp.float32) * 0.1
    x = jax.random.randint(ks[7], (T, B), 0, V, jnp.int32)

    params = pack_params(embed, w_ih, w_hh, b_ih, b_hh, w_attn, b_attn)  # one-time
    out_p = jax.block_until_ready(lstm_self_attn(x, params))             # (T, Hp)
    out = np.asarray(out_p)[:, :H]                                       # slice at consumer

    ref = np.asarray(reference(x, embed, w_ih, w_hh, b_ih, b_hh, w_attn, b_attn))
    # No approximate reciprocals anywhere anymore; tolerance only covers the default
    # (bf16-pass) MXU precision of the matmuls in both the kernel and the reference.
    np.testing.assert_allclose(out, ref, rtol=5e-3, atol=1e-3)

    print("KERNEL_OK")
</pallas_src>

<mosaic_0001>
module attributes {stable_mosaic.version = 11 : i64} {
  func.func @lstm_attn_kernel(%arg0: memref<64x1xi32, #tpu.memory_space<vmem>>, %arg1: memref<128x512xf32, #tpu.memory_space<vmem>>, %arg2: memref<128x512xf32, #tpu.memory_space<vmem>>, %arg3: memref<1x512xf32, #tpu.memory_space<vmem>>, %arg4: memref<1x128xf32, #tpu.memory_space<vmem>>, %arg5: memref<1x1xf32, #tpu.memory_space<smem>>, %arg6: memref<8x64xf32, #tpu.memory_space<vmem>>, %arg7: memref<8x128xf32, #tpu.memory_space<vmem>>, %arg8: memref<64x512xf32, #tpu.memory_space<vmem>>, %arg9: memref<64x128xf32, #tpu.memory_space<vmem>>) attributes {dimension_semantics = [], scalar_prefetch = 0 : i64, scratch_operands = 2 : i64, tpu.core_type = #tpu.core_type<tc>} {
    %0 = tpu.iota {dimensions = array<i32: 1>} : vector<64x128xi32>
    %c0 = arith.constant 0 : index
    %c0_0 = arith.constant 0 : index
    %1 = vector.load %arg0[%c0, %c0_0] : memref<64x1xi32, #tpu.memory_space<vmem>>, vector<64x1xi32>
    %2 = vector.broadcast %1 : vector<64x1xi32> to vector<64x128xi32>
    %3 = arith.cmpi eq, %0, %2 : vector<64x128xi32>
    %4 = arith.extui %3 : vector<64x128xi1> to vector<64x128xi32>
    %5 = arith.sitofp %4 : vector<64x128xi32> to vector<64x128xf32>
    %c0_1 = arith.constant 0 : index
    %c0_2 = arith.constant 0 : index
    %6 = vector.load %arg1[%c0_1, %c0_2] : memref<128x512xf32, #tpu.memory_space<vmem>>, vector<128x512xf32>
    %cst = arith.constant dense<0.000000e+00> : vector<64x512xf32>
    %7 = tpu.matmul %5, %6, %cst {dimension_numbers = #tpu.dot_dimension_numbers<[1], [0], [0], [1], [0, 0, 1, 1], [], []>} : vector<64x128xf32>, vector<128x512xf32>, vector<64x512xf32> -> vector<64x512xf32>
    %c0_3 = arith.constant 0 : index
    %c0_4 = arith.constant 0 : index
    %8 = vector.load %arg3[%c0_3, %c0_4] : memref<1x512xf32, #tpu.memory_space<vmem>>, vector<1x512xf32>
    %9 = vector.broadcast %8 : vector<1x512xf32> to vector<64x512xf32>
    %10 = arith.addf %7, %9 : vector<64x512xf32>
    %c0_5 = arith.constant 0 : index
    %c0_6 = arith.constant 0 : index
    %11 = vector.load %arg8[%c0_5, %c0_6] : memref<64x512xf32, #tpu.memory_space<vmem>>, vector<64x512xf32>
    tpu.vector_store %arg8[%c0_5, %c0_6], %10 {strides = array<i32>} : memref<64x512xf32, #tpu.memory_space<vmem>>, vector<64x512xf32>,
    %cst_7 = arith.constant 0.000000e+00 : f32
    %12 = vector.broadcast %cst_7 : f32 to vector<8x128xf32>
    %cst_8 = arith.constant 0.000000e+00 : f32
    %13 = vector.broadcast %cst_8 : f32 to vector<8x128xf32>
    %c0_i32 = arith.constant 0 : i32
    %c8_i32 = arith.constant 8 : i32
    %14 = arith.muli %c0_i32, %c8_i32 : i32
    %15 = tpu.assume_multiple %14, 8 : i32
    %16 = arith.index_cast %15 : i32 to index
    %c0_9 = arith.constant 0 : index
    %17 = vector.load %arg8[%16, %c0_9] : memref<64x512xf32, #tpu.memory_space<vmem>>, vector<8x512xf32>
    %c0_10 = arith.constant 0 : index
    %c0_11 = arith.constant 0 : index
    %18 = vector.load %arg2[%c0_10, %c0_11] : memref<128x512xf32, #tpu.memory_space<vmem>>, vector<128x512xf32>
    %cst_12 = arith.constant dense<0.000000e+00> : vector<8x512xf32>
    %19 = tpu.matmul %12, %18, %cst_12 {dimension_numbers = #tpu.dot_dimension_numbers<[1], [0], [0], [1], [0, 0, 1, 1], [], []>} : vector<8x128xf32>, vector<128x512xf32>, vector<8x512xf32> -> vector<8x512xf32>
    %20 = arith.addf %17, %19 : vector<8x512xf32>
    %21 = math.tanh %20 : vector<8x512xf32>
    %22 = vector.extract_strided_slice %21 {offsets = [0, 0], sizes = [8, 128], strides = [1, 1]} : vector<8x512xf32> to vector<8x128xf32>
    %cst_13 = arith.constant 5.000000e-01 : f32
    %23 = vector.broadcast %cst_13 : f32 to vector<8x128xf32>
    %24 = arith.mulf %23, %22 : vector<8x128xf32>
    %cst_14 = arith.constant 5.000000e-01 : f32
    %25 = vector.broadcast %cst_14 : f32 to vector<8x128xf32>
    %26 = arith.addf %24, %25 : vector<8x128xf32>
    %27 = vector.extract_strided_slice %21 {offsets = [0, 128], sizes = [8, 128], strides = [1, 1]} : vector<8x512xf32> to vector<8x128xf32>
    %cst_15 = arith.constant 5.000000e-01 : f32
    %28 = vector.broadcast %cst_15 : f32 to vector<8x128xf32>
    %29 = arith.mulf %28, %27 : vector<8x128xf32>
    %cst_16 = arith.constant 5.000000e-01 : f32
    %30 = vector.broadcast %cst_16 : f32 to vector<8x128xf32>
    %31 = arith.addf %29, %30 : vector<8x128xf32>
    %32 = vector.extract_strided_slice %21 {offsets = [0, 256], sizes = [8, 128], strides = [1, 1]} : vector<8x512xf32> to vector<8x128xf32>
    %33 = vector.extract_strided_slice %21 {offsets = [0, 384], sizes = [8, 128], strides = [1, 1]} : vector<8x512xf32> to vector<8x128xf32>
    %cst_17 = arith.constant 5.000000e-01 : f32
    %34 = vector.broadcast %cst_17 : f32 to vector<8x128xf32>
    %35 = arith.mulf %34, %33 : vector<8x128xf32>
    %cst_18 = arith.constant 5.000000e-01 : f32
    %36 = vector.broadcast %cst_18 : f32 to vector<8x128xf32>
    %37 = arith.addf %35, %36 : vector<8x128xf32>
    %38 = arith.mulf %31, %13 : vector<8x128xf32>
    %39 = arith.mulf %26, %32 : vector<8x128xf32>
    %40 = arith.addf %38, %39 : vector<8x128xf32>
    %41 = math.tanh %40 : vector<8x128xf32>
    %42 = arith.mulf %37, %41 : vector<8x128xf32>
    %43 = arith.index_cast %15 : i32 to index
    %c0_19 = arith.constant 0 : index
    %44 = vector.load %arg9[%43, %c0_19] : memref<64x128xf32, #tpu.memory_space<vmem>>, vector<8x128xf32>
    tpu.vector_store %arg9[%43, %c0_19], %42 {strides = array<i32>} : memref<64x128xf32, #tpu.memory_space<vmem>>, vector<8x128xf32>,
    %c1_i32 = arith.constant 1 : i32
    %c8_i32_20 = arith.constant 8 : i32
    %45 = arith.muli %c1_i32, %c8_i32_20 : i32
    %46 = tpu.assume_multiple %45, 8 : i32
    %47 = arith.index_cast %46 : i32 to index
    %c0_21 = arith.constant 0 : index
    %48 = vector.load %arg8[%47, %c0_21] : memref<64x512xf32, #tpu.memory_space<vmem>>, vector<8x512xf32>
    %c0_22 = arith.constant 0 : index
    %c0_23 = arith.constant 0 : index
    %49 = vector.load %arg2[%c0_22, %c0_23] : memref<128x512xf32, #tpu.memory_space<vmem>>, vector<128x512xf32>
    %cst_24 = arith.constant dense<0.000000e+00> : vector<8x512xf32>
    %50 = tpu.matmul %42, %49, %cst_24 {dimension_numbers = #tpu.dot_dimension_numbers<[1], [0], [0], [1], [0, 0, 1, 1], [], []>} : vector<8x128xf32>, vector<128x512xf32>, vector<8x512xf32> -> vector<8x512xf32>
    %51 = arith.addf %48, %50 : vector<8x512xf32>
    %52 = math.tanh %51 : vector<8x512xf32>
    %53 = vector.extract_strided_slice %52 {offsets = [0, 0], sizes = [8, 128], strides = [1, 1]} : vector<8x512xf32> to vector<8x128xf32>
    %cst_25 = arith.constant 5.000000e-01 : f32
    %54 = vector.broadcast %cst_25 : f32 to vector<8x128xf32>
    %55 = arith.mulf %54, %53 : vector<8x128xf32>
    %cst_26 = arith.constant 5.000000e-01 : f32
    %56 = vector.broadcast %cst_26 : f32 to vector<8x128xf32>
    %57 = arith.addf %55, %56 : vector<8x128xf32>
    %58 = vector.extract_strided_slice %52 {offsets = [0, 128], sizes = [8, 128], strides = [1, 1]} : vector<8x512xf32> to vector<8x128xf32>
    %cst_27 = arith.constant 5.000000e-01 : f32
    %59 = vector.broadcast %cst_27 : f32 to vector<8x128xf32>
    %60 = arith.mulf %59, %58 : vector<8x128xf32>
    %cst_28 = arith.constant 5.000000e-01 : f32
    %61 = vector.broadcast %cst_28 : f32 to vector<8x128xf32>
    %62 = arith.addf %60, %61 : vector<8x128xf32>
    %63 = vector.extract_strided_slice %52 {offsets = [0, 256], sizes = [8, 128], strides = [1, 1]} : vector<8x512xf32> to vector<8x128xf32>
    %64 = vector.extract_strided_slice %52 {offsets = [0, 384], sizes = [8, 128], strides = [1, 1]} : vector<8x512xf32> to vector<8x128xf32>
    %cst_29 = arith.constant 5.000000e-01 : f32
    %65 = vector.broadcast %cst_29 : f32 to vector<8x128xf32>
    %66 = arith.mulf %65, %64 : vector<8x128xf32>
    %cst_30 = arith.constant 5.000000e-01 : f32
    %67 = vector.broadcast %cst_30 : f32 to vector<8x128xf32>
    %68 = arith.addf %66, %67 : vector<8x128xf32>
    %69 = arith.mulf %62, %40 : vector<8x128xf32>
    %70 = arith.mulf %57, %63 : vector<8x128xf32>
    %71 = arith.addf %69, %70 : vector<8x128xf32>
    %72 = math.tanh %71 : vector<8x128xf32>
    %73 = arith.mulf %68, %72 : vector<8x128xf32>
    %74 = arith.index_cast %46 : i32 to index
    %c0_31 = arith.constant 0 : index
    %75 = vector.load %arg9[%74, %c0_31] : memref<64x128xf32, #tpu.memory_space<vmem>>, vector<8x128xf32>
    tpu.vector_store %arg9[%74, %c0_31], %73 {strides = array<i32>} : memref<64x128xf32, #tpu.memory_space<vmem>>, vector<8x128xf32>,
    %c2_i32 = arith.constant 2 : i32
    %c8_i32_32 = arith.constant 8 : i32
    %76 = arith.muli %c2_i32, %c8_i32_32 : i32
    %77 = tpu.assume_multiple %76, 8 : i32
    %78 = arith.index_cast %77 : i32 to index
    %c0_33 = arith.constant 0 : index
    %79 = vector.load %arg8[%78, %c0_33] : memref<64x512xf32, #tpu.memory_space<vmem>>, vector<8x512xf32>
    %c0_34 = arith.constant 0 : index
    %c0_35 = arith.constant 0 : index
    %80 = vector.load %arg2[%c0_34, %c0_35] : memref<128x512xf32, #tpu.memory_space<vmem>>, vector<128x512xf32>
    %cst_36 = arith.constant dense<0.000000e+00> : vector<8x512xf32>
    %81 = tpu.matmul %73, %80, %cst_36 {dimension_numbers = #tpu.dot_dimension_numbers<[1], [0], [0], [1], [0, 0, 1, 1], [], []>} : vector<8x128xf32>, vector<128x512xf32>, vector<8x512xf32> -> vector<8x512xf32>
    %82 = arith.addf %79, %81 : vector<8x512xf32>
    %83 = math.tanh %82 : vector<8x512xf32>
    %84 = vector.extract_strided_slice %83 {offsets = [0, 0], sizes = [8, 128], strides = [1, 1]} : vector<8x512xf32> to vector<8x128xf32>
    %cst_37 = arith.constant 5.000000e-01 : f32
    %85 = vector.broadcast %cst_37 : f32 to vector<8x128xf32>
    %86 = arith.mulf %85, %84 : vector<8x128xf32>
    %cst_38 = arith.constant 5.000000e-01 : f32
    %87 = vector.broadcast %cst_38 : f32 to vector<8x128xf32>
    %88 = arith.addf %86, %87 : vector<8x128xf32>
    %89 = vector.extract_strided_slice %83 {offsets = [0, 128], sizes = [8, 128], strides = [1, 1]} : vector<8x512xf32> to vector<8x128xf32>
    %cst_39 = arith.constant 5.000000e-01 : f32
    %90 = vector.broadcast %cst_39 : f32 to vector<8x128xf32>
    %91 = arith.mulf %90, %89 : vector<8x128xf32>
    %cst_40 = arith.constant 5.000000e-01 : f32
    %92 = vector.broadcast %cst_40 : f32 to vector<8x128xf32>
    %93 = arith.addf %91, %92 : vector<8x128xf32>
    %94 = vector.extract_strided_slice %83 {offsets = [0, 256], sizes = [8, 128], strides = [1, 1]} : vector<8x512xf32> to vector<8x128xf32>
    %95 = vector.extract_strided_slice %83 {offsets = [0, 384], sizes = [8, 128], strides = [1, 1]} : vector<8x512xf32> to vector<8x128xf32>
    %cst_41 = arith.constant 5.000000e-01 : f32
    %96 = vector.broadcast %cst_41 : f32 to vector<8x128xf32>
    %97 = arith.mulf %96, %95 : vector<8x128xf32>
    %cst_42 = arith.constant 5.000000e-01 : f32
    %98 = vector.broadcast %cst_42 : f32 to vector<8x128xf32>
    %99 = arith.addf %97, %98 : vector<8x128xf32>
    %100 = arith.mulf %93, %71 : vector<8x128xf32>
    %101 = arith.mulf %88, %94 : vector<8x128xf32>
    %102 = arith.addf %100, %101 : vector<8x128xf32>
    %103 = math.tanh %102 : vector<8x128xf32>
    %104 = arith.mulf %99, %103 : vector<8x128xf32>
    %105 = arith.index_cast %77 : i32 to index
    %c0_43 = arith.constant 0 : index
    %106 = vector.load %arg9[%105, %c0_43] : memref<64x128xf32, #tpu.memory_space<vmem>>, vector<8x128xf32>
    tpu.vector_store %arg9[%105, %c0_43], %104 {strides = array<i32>} : memref<64x128xf32, #tpu.memory_space<vmem>>, vector<8x128xf32>,
    %c3_i32 = arith.constant 3 : i32
    %c8_i32_44 = arith.constant 8 : i32
    %107 = arith.muli %c3_i32, %c8_i32_44 : i32
    %108 = tpu.assume_multiple %107, 8 : i32
    %109 = arith.index_cast %108 : i32 to index
    %c0_45 = arith.constant 0 : index
    %110 = vector.load %arg8[%109, %c0_45] : memref<64x512xf32, #tpu.memory_space<vmem>>, vector<8x512xf32>
    %c0_46 = arith.constant 0 : index
    %c0_47 = arith.constant 0 : index
    %111 = vector.load %arg2[%c0_46, %c0_47] : memref<128x512xf32, #tpu.memory_space<vmem>>, vector<128x512xf32>
    %cst_48 = arith.constant dense<0.000000e+00> : vector<8x512xf32>
    %112 = tpu.matmul %104, %111, %cst_48 {dimension_numbers = #tpu.dot_dimension_numbers<[1], [0], [0], [1], [0, 0, 1, 1], [], []>} : vector<8x128xf32>, vector<128x512xf32>, vector<8x512xf32> -> vector<8x512xf32>
    %113 = arith.addf %110, %112 : vector<8x512xf32>
    %114 = math.tanh %113 : vector<8x512xf32>
    %115 = vector.extract_strided_slice %114 {offsets = [0, 0], sizes = [8, 128], strides = [1, 1]} : vector<8x512xf32> to vector<8x128xf32>
    %cst_49 = arith.constant 5.000000e-01 : f32
    %116 = vector.broadcast %cst_49 : f32 to vector<8x128xf32>
    %117 = arith.mulf %116, %115 : vector<8x128xf32>
    %cst_50 = arith.constant 5.000000e-01 : f32
    %118 = vector.broadcast %cst_50 : f32 to vector<8x128xf32>
    %119 = arith.addf %117, %118 : vector<8x128xf32>
    %120 = vector.extract_strided_slice %114 {offsets = [0, 128], sizes = [8, 128], strides = [1, 1]} : vector<8x512xf32> to vector<8x128xf32>
    %cst_51 = arith.constant 5.000000e-01 : f32
    %121 = vector.broadcast %cst_51 : f32 to vector<8x128xf32>
    %122 = arith.mulf %121, %120 : vector<8x128xf32>
    %cst_52 = arith.constant 5.000000e-01 : f32
    %123 = vector.broadcast %cst_52 : f32 to vector<8x128xf32>
    %124 = arith.addf %122, %123 : vector<8x128xf32>
    %125 = vector.extract_strided_slice %114 {offsets = [0, 256], sizes = [8, 128], strides = [1, 1]} : vector<8x512xf32> to vector<8x128xf32>
    %126 = vector.extract_strided_slice %114 {offsets = [0, 384], sizes = [8, 128], strides = [1, 1]} : vector<8x512xf32> to vector<8x128xf32>
    %cst_53 = arith.constant 5.000000e-01 : f32
    %127 = vector.broadcast %cst_53 : f32 to vector<8x128xf32>
    %128 = arith.mulf %127, %126 : vector<8x128xf32>
    %cst_54 = arith.constant 5.000000e-01 : f32
    %129 = vector.broadcast %cst_54 : f32 to vector<8x128xf32>
    %130 = arith.addf %128, %129 : vector<8x128xf32>
    %131 = arith.mulf %124, %102 : vector<8x128xf32>
    %132 = arith.mulf %119, %125 : vector<8x128xf32>
    %133 = arith.addf %131, %132 : vector<8x128xf32>
    %134 = math.tanh %133 : vector<8x128xf32>
    %135 = arith.mulf %130, %134 : vector<8x128xf32>
    %136 = arith.index_cast %108 : i32 to index
    %c0_55 = arith.constant 0 : index
    %137 = vector.load %arg9[%136, %c0_55] : memref<64x128xf32, #tpu.memory_space<vmem>>, vector<8x128xf32>
    tpu.vector_store %arg9[%136, %c0_55], %135 {strides = array<i32>} : memref<64x128xf32, #tpu.memory_space<vmem>>, vector<8x128xf32>,
    %c4_i32 = arith.constant 4 : i32
    %c8_i32_56 = arith.constant 8 : i32
    %138 = arith.muli %c4_i32, %c8_i32_56 : i32
    %139 = tpu.assume_multiple %138, 8 : i32
    %140 = arith.index_cast %139 : i32 to index
    %c0_57 = arith.constant 0 : index
    %141 = vector.load %arg8[%140, %c0_57] : memref<64x512xf32, #tpu.memory_space<vmem>>, vector<8x512xf32>
    %c0_58 = arith.constant 0 : index
    %c0_59 = arith.constant 0 : index
    %142 = vector.load %arg2[%c0_58, %c0_59] : memref<128x512xf32, #tpu.memory_space<vmem>>, vector<128x512xf32>
    %cst_60 = arith.constant dense<0.000000e+00> : vector<8x512xf32>
    %143 = tpu.matmul %135, %142, %cst_60 {dimension_numbers = #tpu.dot_dimension_numbers<[1], [0], [0], [1], [0, 0, 1, 1], [], []>} : vector<8x128xf32>, vector<128x512xf32>, vector<8x512xf32> -> vector<8x512xf32>
    %144 = arith.addf %141, %143 : vector<8x512xf32>
    %145 = math.tanh %144 : vector<8x512xf32>
    %146 = vector.extract_strided_slice %145 {offsets = [0, 0], sizes = [8, 128], strides = [1, 1]} : vector<8x512xf32> to vector<8x128xf32>
    %cst_61 = arith.constant 5.000000e-01 : f32
    %147 = vector.broadcast %cst_61 : f32 to vector<8x128xf32>
    %148 = arith.mulf %147, %146 : vector<8x128xf32>
    %cst_62 = arith.constant 5.000000e-01 : f32
    %149 = vector.broadcast %cst_62 : f32 to vector<8x128xf32>
    %150 = arith.addf %148, %149 : vector<8x128xf32>
    %151 = vector.extract_strided_slice %145 {offsets = [0, 128], sizes = [8, 128], strides = [1, 1]} : vector<8x512xf32> to vector<8x128xf32>
    %cst_63 = arith.constant 5.000000e-01 : f32
    %152 = vector.broadcast %cst_63 : f32 to vector<8x128xf32>
    %153 = arith.mulf %152, %151 : vector<8x128xf32>
    %cst_64 = arith.constant 5.000000e-01 : f32
    %154 = vector.broadcast %cst_64 : f32 to vector<8x128xf32>
    %155 = arith.addf %153, %154 : vector<8x128xf32>
    %156 = vector.extract_strided_slice %145 {offsets = [0, 256], sizes = [8, 128], strides = [1, 1]} : vector<8x512xf32> to vector<8x128xf32>
    %157 = vector.extract_strided_slice %145 {offsets = [0, 384], sizes = [8, 128], strides = [1, 1]} : vector<8x512xf32> to vector<8x128xf32>
    %cst_65 = arith.constant 5.000000e-01 : f32
    %158 = vector.broadcast %cst_65 : f32 to vector<8x128xf32>
    %159 = arith.mulf %158, %157 : vector<8x128xf32>
    %cst_66 = arith.constant 5.000000e-01 : f32
    %160 = vector.broadcast %cst_66 : f32 to vector<8x128xf32>
    %161 = arith.addf %159, %160 : vector<8x128xf32>
    %162 = arith.mulf %155, %133 : vector<8x128xf32>
    %163 = arith.mulf %150, %156 : vector<8x128xf32>
    %164 = arith.addf %162, %163 : vector<8x128xf32>
    %165 = math.tanh %164 : vector<8x128xf32>
    %166 = arith.mulf %161, %165 : vector<8x128xf32>
    %167 = arith.index_cast %139 : i32 to index
    %c0_67 = arith.constant 0 : index
    %168 = vector.load %arg9[%167, %c0_67] : memref<64x128xf32, #tpu.memory_space<vmem>>, vector<8x128xf32>
    tpu.vector_store %arg9[%167, %c0_67], %166 {strides = array<i32>} : memref<64x128xf32, #tpu.memory_space<vmem>>, vector<8x128xf32>,
    %c5_i32 = arith.constant 5 : i32
    %c8_i32_68 = arith.constant 8 : i32
    %169 = arith.muli %c5_i32, %c8_i32_68 : i32
    %170 = tpu.assume_multiple %169, 8 : i32
    %171 = arith.index_cast %170 : i32 to index
    %c0_69 = arith.constant 0 : index
    %172 = vector.load %arg8[%171, %c0_69] : memref<64x512xf32, #tpu.memory_space<vmem>>, vector<8x512xf32>
    %c0_70 = arith.constant 0 : index
    %c0_71 = arith.constant 0 : index
    %173 = vector.load %arg2[%c0_70, %c0_71] : memref<128x512xf32, #tpu.memory_space<vmem>>, vector<128x512xf32>
    %cst_72 = arith.constant dense<0.000000e+00> : vector<8x512xf32>
    %174 = tpu.matmul %166, %173, %cst_72 {dimension_numbers = #tpu.dot_dimension_numbers<[1], [0], [0], [1], [0, 0, 1, 1], [], []>} : vector<8x128xf32>, vector<128x512xf32>, vector<8x512xf32> -> vector<8x512xf32>
    %175 = arith.addf %172, %174 : vector<8x512xf32>
    %176 = math.tanh %175 : vector<8x512xf32>
    %177 = vector.extract_strided_slice %176 {offsets = [0, 0], sizes = [8, 128], strides = [1, 1]} : vector<8x512xf32> to vector<8x128xf32>
    %cst_73 = arith.constant 5.000000e-01 : f32
    %178 = vector.broadcast %cst_73 : f32 to vector<8x128xf32>
    %179 = arith.mulf %178, %177 : vector<8x128xf32>
    %cst_74 = arith.constant 5.000000e-01 : f32
    %180 = vector.broadcast %cst_74 : f32 to vector<8x128xf32>
    %181 = arith.addf %179, %180 : vector<8x128xf32>
    %182 = vector.extract_strided_slice %176 {offsets = [0, 128], sizes = [8, 128], strides = [1, 1]} : vector<8x512xf32> to vector<8x128xf32>
    %cst_75 = arith.constant 5.000000e-01 : f32
    %183 = vector.broadcast %cst_75 : f32 to vector<8x128xf32>
    %184 = arith.mulf %183, %182 : vector<8x128xf32>
    %cst_76 = arith.constant 5.000000e-01 : f32
    %185 = vector.broadcast %cst_76 : f32 to vector<8x128xf32>
    %186 = arith.addf %184, %185 : vector<8x128xf32>
    %187 = vector.extract_strided_slice %176 {offsets = [0, 256], sizes = [8, 128], strides = [1, 1]} : vector<8x512xf32> to vector<8x128xf32>
    %188 = vector.extract_strided_slice %176 {offsets = [0, 384], sizes = [8, 128], strides = [1, 1]} : vector<8x512xf32> to vector<8x128xf32>
    %cst_77 = arith.constant 5.000000e-01 : f32
    %189 = vector.broadcast %cst_77 : f32 to vector<8x128xf32>
    %190 = arith.mulf %189, %188 : vector<8x128xf32>
    %cst_78 = arith.constant 5.000000e-01 : f32
    %191 = vector.broadcast %cst_78 : f32 to vector<8x128xf32>
    %192 = arith.addf %190, %191 : vector<8x128xf32>
    %193 = arith.mulf %186, %164 : vector<8x128xf32>
    %194 = arith.mulf %181, %187 : vector<8x128xf32>
    %195 = arith.addf %193, %194 : vector<8x128xf32>
    %196 = math.tanh %195 : vector<8x128xf32>
    %197 = arith.mulf %192, %196 : vector<8x128xf32>
    %198 = arith.index_cast %170 : i32 to index
    %c0_79 = arith.constant 0 : index
    %199 = vector.load %arg9[%198, %c0_79] : memref<64x128xf32, #tpu.memory_space<vmem>>, vector<8x128xf32>
    tpu.vector_store %arg9[%198, %c0_79], %197 {strides = array<i32>} : memref<64x128xf32, #tpu.memory_space<vmem>>, vector<8x128xf32>,
    %c6_i32 = arith.constant 6 : i32
    %c8_i32_80 = arith.constant 8 : i32
    %200 = arith.muli %c6_i32, %c8_i32_80 : i32
    %201 = tpu.assume_multiple %200, 8 : i32
    %202 = arith.index_cast %201 : i32 to index
    %c0_81 = arith.constant 0 : index
    %203 = vector.load %arg8[%202, %c0_81] : memref<64x512xf32, #tpu.memory_space<vmem>>, vector<8x512xf32>
    %c0_82 = arith.constant 0 : index
    %c0_83 = arith.constant 0 : index
    %204 = vector.load %arg2[%c0_82, %c0_83] : memref<128x512xf32, #tpu.memory_space<vmem>>, vector<128x512xf32>
    %cst_84 = arith.constant dense<0.000000e+00> : vector<8x512xf32>
    %205 = tpu.matmul %197, %204, %cst_84 {dimension_numbers = #tpu.dot_dimension_numbers<[1], [0], [0], [1], [0, 0, 1, 1], [], []>} : vector<8x128xf32>, vector<128x512xf32>, vector<8x512xf32> -> vector<8x512xf32>
    %206 = arith.addf %203, %205 : vector<8x512xf32>
    %207 = math.tanh %206 : vector<8x512xf32>
    %208 = vector.extract_strided_slice %207 {offsets = [0, 0], sizes = [8, 128], strides = [1, 1]} : vector<8x512xf32> to vector<8x128xf32>
    %cst_85 = arith.constant 5.000000e-01 : f32
    %209 = vector.broadcast %cst_85 : f32 to vector<8x128xf32>
    %210 = arith.mulf %209, %208 : vector<8x128xf32>
    %cst_86 = arith.constant 5.000000e-01 : f32
    %211 = vector.broadcast %cst_86 : f32 to vector<8x128xf32>
    %212 = arith.addf %210, %211 : vector<8x128xf32>
    %213 = vector.extract_strided_slice %207 {offsets = [0, 128], sizes = [8, 128], strides = [1, 1]} : vector<8x512xf32> to vector<8x128xf32>
    %cst_87 = arith.constant 5.000000e-01 : f32
    %214 = vector.broadcast %cst_87 : f32 to vector<8x128xf32>
    %215 = arith.mulf %214, %213 : vector<8x128xf32>
    %cst_88 = arith.constant 5.000000e-01 : f32
    %216 = vector.broadcast %cst_88 : f32 to vector<8x128xf32>
    %217 = arith.addf %215, %216 : vector<8x128xf32>
    %218 = vector.extract_strided_slice %207 {offsets = [0, 256], sizes = [8, 128], strides = [1, 1]} : vector<8x512xf32> to vector<8x128xf32>
    %219 = vector.extract_strided_slice %207 {offsets = [0, 384], sizes = [8, 128], strides = [1, 1]} : vector<8x512xf32> to vector<8x128xf32>
    %cst_89 = arith.constant 5.000000e-01 : f32
    %220 = vector.broadcast %cst_89 : f32 to vector<8x128xf32>
    %221 = arith.mulf %220, %219 : vector<8x128xf32>
    %cst_90 = arith.constant 5.000000e-01 : f32
    %222 = vector.broadcast %cst_90 : f32 to vector<8x128xf32>
    %223 = arith.addf %221, %222 : vector<8x128xf32>
    %224 = arith.mulf %217, %195 : vector<8x128xf32>
    %225 = arith.mulf %212, %218 : vector<8x128xf32>
    %226 = arith.addf %224, %225 : vector<8x128xf32>
    %227 = math.tanh %226 : vector<8x128xf32>
    %228 = arith.mulf %223, %227 : vector<8x128xf32>
    %229 = arith.index_cast %201 : i32 to index
    %c0_91 = arith.constant 0 : index
    %230 = vector.load %arg9[%229, %c0_91] : memref<64x128xf32, #tpu.memory_space<vmem>>, vector<8x128xf32>
    tpu.vector_store %arg9[%229, %c0_91], %228 {strides = array<i32>} : memref<64x128xf32, #tpu.memory_space<vmem>>, vector<8x128xf32>,
    %c7_i32 = arith.constant 7 : i32
    %c8_i32_92 = arith.constant 8 : i32
    %231 = arith.muli %c7_i32, %c8_i32_92 : i32
    %232 = tpu.assume_multiple %231, 8 : i32
    %233 = arith.index_cast %232 : i32 to index
    %c0_93 = arith.constant 0 : index
    %234 = vector.load %arg8[%233, %c0_93] : memref<64x512xf32, #tpu.memory_space<vmem>>, vector<8x512xf32>
    %c0_94 = arith.constant 0 : index
    %c0_95 = arith.constant 0 : index
    %235 = vector.load %arg2[%c0_94, %c0_95] : memref<128x512xf32, #tpu.memory_space<vmem>>, vector<128x512xf32>
    %cst_96 = arith.constant dense<0.000000e+00> : vector<8x512xf32>
    %236 = tpu.matmul %228, %235, %cst_96 {dimension_numbers = #tpu.dot_dimension_numbers<[1], [0], [0], [1], [0, 0, 1, 1], [], []>} : vector<8x128xf32>, vector<128x512xf32>, vector<8x512xf32> -> vector<8x512xf32>
    %237 = arith.addf %234, %236 : vector<8x512xf32>
    %238 = math.tanh %237 : vector<8x512xf32>
    %239 = vector.extract_strided_slice %238 {offsets = [0, 0], sizes = [8, 128], strides = [1, 1]} : vector<8x512xf32> to vector<8x128xf32>
    %cst_97 = arith.constant 5.000000e-01 : f32
    %240 = vector.broadcast %cst_97 : f32 to vector<8x128xf32>
    %241 = arith.mulf %240, %239 : vector<8x128xf32>
    %cst_98 = arith.constant 5.000000e-01 : f32
    %242 = vector.broadcast %cst_98 : f32 to vector<8x128xf32>
    %243 = arith.addf %241, %242 : vector<8x128xf32>
    %244 = vector.extract_strided_slice %238 {offsets = [0, 128], sizes = [8, 128], strides = [1, 1]} : vector<8x512xf32> to vector<8x128xf32>
    %cst_99 = arith.constant 5.000000e-01 : f32
    %245 = vector.broadcast %cst_99 : f32 to vector<8x128xf32>
    %246 = arith.mulf %245, %244 : vector<8x128xf32>
    %cst_100 = arith.constant 5.000000e-01 : f32
    %247 = vector.broadcast %cst_100 : f32 to vector<8x128xf32>
    %248 = arith.addf %246, %247 : vector<8x128xf32>
    %249 = vector.extract_strided_slice %238 {offsets = [0, 256], sizes = [8, 128], strides = [1, 1]} : vector<8x512xf32> to vector<8x128xf32>
    %250 = vector.extract_strided_slice %238 {offsets = [0, 384], sizes = [8, 128], strides = [1, 1]} : vector<8x512xf32> to vector<8x128xf32>
    %cst_101 = arith.constant 5.000000e-01 : f32
    %251 = vector.broadcast %cst_101 : f32 to vector<8x128xf32>
    %252 = arith.mulf %251, %250 : vector<8x128xf32>
    %cst_102 = arith.constant 5.000000e-01 : f32
    %253 = vector.broadcast %cst_102 : f32 to vector<8x128xf32>
    %254 = arith.addf %252, %253 : vector<8x128xf32>
    %255 = arith.mulf %248, %226 : vector<8x128xf32>
    %256 = arith.mulf %243, %249 : vector<8x128xf32>
    %257 = arith.addf %255, %256 : vector<8x128xf32>
    %258 = math.tanh %257 : vector<8x128xf32>
    %259 = arith.mulf %254, %258 : vector<8x128xf32>
    %260 = arith.index_cast %232 : i32 to index
    %c0_103 = arith.constant 0 : index
    %261 = vector.load %arg9[%260, %c0_103] : memref<64x128xf32, #tpu.memory_space<vmem>>, vector<8x128xf32>
    tpu.vector_store %arg9[%260, %c0_103], %259 {strides = array<i32>} : memref<64x128xf32, #tpu.memory_space<vmem>>, vector<8x128xf32>,
    %c8_i32_104 = arith.constant 8 : i32
    %c0_105 = arith.constant 0 : index
    %c0_106 = arith.constant 0 : index
    %262 = vector.load %arg9[%c0_105, %c0_106] : memref<64x128xf32, #tpu.memory_space<vmem>>, vector<64x128xf32>
    %c0_107 = arith.constant 0 : index
    %c0_108 = arith.constant 0 : index
    %263 = vector.load %arg4[%c0_107, %c0_108] : memref<1x128xf32, #tpu.memory_space<vmem>>, vector<1x128xf32>
    %264 = vector.broadcast %263 : vector<1x128xf32> to vector<64x128xf32>
    %265 = arith.mulf %262, %264 : vector<64x128xf32>
    %cst_109 = arith.constant dense<0.000000e+00> : vector<64xf32>
    %266 = vector.multi_reduction <add>, %265, %cst_109 [1] : vector<64x128xf32> to vector<64xf32>
    %267 = vector.shape_cast %266 : vector<64xf32> to vector<64x1xf32>
    %c0_110 = arith.constant 0 : index
    %c0_111 = arith.constant 0 : index
    %268 = memref.load %arg5[%c0_110, %c0_111] : memref<1x1xf32, #tpu.memory_space<smem>>
    %269 = vector.broadcast %268 : f32 to vector<64x1xf32>
    %270 = arith.addf %267, %269 : vector<64x1xf32>
    %cst_112 = arith.constant dense<0xFF800000> : vector<1xf32>
    %271 = vector.multi_reduction <maximumf>, %270, %cst_112 [0] : vector<64x1xf32> to vector<1xf32>
    %272 = vector.shape_cast %271 : vector<1xf32> to vector<1x1xf32>
    %273 = vector.broadcast %272 : vector<1x1xf32> to vector<64x1xf32>
    %274 = arith.subf %270, %273 : vector<64x1xf32>
    %275 = math.exp %274 : vector<64x1xf32>
    %c0_113 = arith.constant 0 : index
    %c0_114 = arith.constant 0 : index
    %276 = vector.load %arg6[%c0_113, %c0_114] : memref<8x64xf32, #tpu.memory_space<vmem>>, vector<8x64xf32>
    %277 = vector.broadcast %275 : vector<64x1xf32> to vector<64x128xf32>
    %278 = arith.mulf %277, %262 : vector<64x128xf32>
    %cst_115 = arith.constant dense<0.000000e+00> : vector<8x128xf32>
    %279 = tpu.matmul %276, %278, %cst_115 {dimension_numbers = #tpu.dot_dimension_numbers<[1], [0], [0], [1], [0, 0, 1, 1], [], []>} : vector<8x64xf32>, vector<64x128xf32>, vector<8x128xf32> -> vector<8x128xf32>
    %cst_116 = arith.constant dense<0.000000e+00> : vector<8x1xf32>
    %280 = tpu.matmul %276, %275, %cst_116 {dimension_numbers = #tpu.dot_dimension_numbers<[1], [0], [0], [1], [0, 0, 1, 1], [], []>} : vector<8x64xf32>, vector<64x1xf32>, vector<8x1xf32> -> vector<8x1xf32>
    %281 = vector.broadcast %280 : vector<8x1xf32> to vector<8x128xf32>
    %282 = arith.divf %279, %281 : vector<8x128xf32>
    %c0_117 = arith.constant 0 : index
    %c0_118 = arith.constant 0 : index
    %283 = vector.load %arg7[%c0_117, %c0_118] : memref<8x128xf32, #tpu.memory_space<vmem>>, vector<8x128xf32>
    tpu.vector_store %arg7[%c0_117, %c0_118], %282 {strides = array<i32>} : memref<8x128xf32, #tpu.memory_space<vmem>>, vector<8x128xf32>,
    return
  }
}

</mosaic_0001>

<bundles_post_ra>
// kernel: lstm_self_attn.1
= control target key start
LH: loop header
LB: loop body
LE: loop exit
PB: predicated region body
PF: predicated region fallthrough
CT: control target
= control target key end

     0   :  { %13 = vsyncpa [#allocation6], 0  ;;  %s4225_s0 = inlined_call_operand.vmem [shape: s32[64,1], index: 0, kind: input, shape index: {}]   ;;  %s4226_s1 = inlined_call_operand.hbm [shape: f32[128,512], index: 1, kind: input, shape index: {}]   ;;  %s4227_s2 = inlined_call_operand.hbm [shape: f32[128,512], index: 2, kind: input, shape index: {}]   ;;  %s4228_s3 = inlined_call_operand.vmem [shape: f32[1,512], index: 3, kind: input, shape index: {}]   ;;  %s4229_s4 = inlined_call_operand.vmem [shape: f32[1,128], index: 4, kind: input, shape index: {}]   ;;  %s4230_s5 = inlined_call_operand.<no memory space> [shape: f32[1,1], index: 5, kind: input, shape index: {}]   ;;  %s4231_s6 = inlined_call_operand.vmem [shape: f32[8,64], index: 6, kind: input, shape index: {}]   ;;  %s4232_s7 = inlined_call_operand.hbm [shape: f32[8,128], index: 7, kind: output, shape index: {}]  }
   0x1   :  { %14 = vsyncpa [#allocation9], 0 }
   0x2   :  { %15 = vsyncpa [#allocation7], 0  ;;  %s3529_s24 = smov [#allocation5]   ;;  %s3457_s28 = scalar_lea.hbm %s4226_s1, 8192 }
   0x3   :  { %s23_s25 = sshll.u32 %s3529_s24, 4  ;;  %p3458_p0 = scmp.ne.s32.totalorder %s4226_s1, %s3457_s28  ;;  %s24_s25 = int_to_ptr.vmem [resolvable:$true] %s23_s25 }
   0x4   :  { %p3461_p1 = scmp.lt.u32.totalorder %s3457_s28, %s4226_s1 }
   0x6   :  { %p3463_p2 = pnand %p3461_p1, %p3458_p0 }
   0x8   :  { %3466 = shalt.err (!%p3463_p2)
}
   0x9   :  { %s3467_s10 = scalar_lea.vmem %s24_s25, 8192  ;;  %p3472_p4 = scmp.lt.s32.totalorder %s24_s25, %s24_s25 }
   0xa   :  { %p3468_p3 = scmp.ne.s32.totalorder %s24_s25, %s3467_s10  ;;  %p3473_p5 = scmp.lt.s32.totalorder %s3467_s10, %s3467_s10 }
   0xc   :  { %p3474_p6 = por %p3473_p5, %p3472_p4 }
   0xe   :  { %p3475_p7 = pnand %p3474_p6, %p3468_p3 }
  0x10   :  { %3478 = shalt.err (!%p3475_p7)
}
  0x11   :  { %s3530_s11 = smov 512   ;;  %s3531_s12 = smov 32  }
  0x12   :  { %29 = dma.hbm_to_vmem [thread:$0]  %s4226_s1, 8192, %s24_s25, [#allocation6], %s3530_s11, %s3530_s11, %s3531_s12  }
  0x13   :  { %s3532_s15 = smov [#allocation8]   ;;  %s3479_s19 = scalar_lea.hbm %s4227_s2, 8192 }
  0x14   :  { %s35_s16 = sshll.u32 %s3532_s15, 4  ;;  %p3480_p8 = scmp.ne.s32.totalorder %s4227_s2, %s3479_s19  ;;  %s36_s16 = int_to_ptr.vmem [resolvable:$true] %s35_s16 }
  0x15   :  { %p3483_p9 = scmp.lt.u32.totalorder %s3479_s19, %s4227_s2 }
  0x17   :  { %p3485_p10 = pnand %p3483_p9, %p3480_p8 }
  0x19   :  { %3488 = shalt.err (!%p3485_p10)
}
  0x1a   :  { %s3489_s24 = scalar_lea.vmem %s36_s16, 8192  ;;  %p3494_p12 = scmp.lt.s32.totalorder %s36_s16, %s36_s16 }
  0x1b   :  { %p3490_p11 = scmp.ne.s32.totalorder %s36_s16, %s3489_s24  ;;  %p3495_p13 = scmp.lt.s32.totalorder %s3489_s24, %s3489_s24 }
  0x1d   :  { %p3496_p0 = por %p3495_p13, %p3494_p12 }
  0x1f   :  { %p3497_p1 = pnand %p3496_p0, %p3490_p11 }
  0x21   :  { %3500 = shalt.err (!%p3497_p1)
}
  0x22   :  { %41 = dma.hbm_to_vmem [thread:$0]  %s4227_s2, 8192, %s36_s16, [#allocation9], %s3530_s11, %s3530_s11, %s3531_s12  }
  0x23   :  { %3523 = dma.done.wait [#allocation6], 8192  }
  0x24   :  { %3524 = vsyncadd [#allocation6], 4294959104 }
  0x25   :  { %3525 = dma.done.wait [#allocation9], 8192  }
  0x26   :  { %3526 = vsyncadd [#allocation9], 4294959104  ;;  %v3533_v0 = vmov 0   ;;  %v60_v1 = vld [vmem:[%s4225_s0 + $0x10] sm:$0xff]  ;;  %v58_v2 = vld [vmem:[%s4225_s0] sm:$0xff]  ;;  %v3534_v6 = vmov 0.0  }
  0x27   :  { %3357 = vset.pattern.permute.xlu1 %v3533_v0  ;;  %3356 = vset.pattern.permute.xlu0 %v3533_v0  ;;  %v61_v3 = vld [vmem:[%s4225_s0 + $0x18] sm:$0xff]  ;;  %v59_v4 = vld [vmem:[%s4225_s0 + $0x8] sm:$0xff]  ;;  %v114_v8 = vld [vmem:[#allocation5] sm:$0xff]  ;;  %vm3537_vm8 = vmmov 0   ;;  %vm2424_vm9 = vcmask 523264   ;;  %s3538_s24 = smov [#allocation10]  }
  0x28   :  { %73 = vperm.xlu1 %3357, %v60_v1   ;;  %67 = vperm.xlu0 %3356, %v58_v2   ;;  %v115_v5 = vld [vmem:[#allocation5 + $0x8] sm:$0xff]  ;;  %v118_v9 = vld [vmem:[#allocation5 + $0x20] sm:$0xff]  ;;  %v117_v14 = vld [vmem:[#allocation5 + $0x18] sm:$0xff]  ;;  %s2582_s1 = sshll.u32 %s3538_s24, 4  ;;  %s2583_s1 = int_to_ptr.vmem [resolvable:$true] %s2582_s1 }
  0x29   :  { %264 = vmatprep.mubr.f32.mxu0 %v3534_v6  ;;  %377 = vmatprep.mubr.f32.mxu1 %v3534_v6  ;;  %v119_v7 = vld [vmem:[#allocation5 + $0x28] sm:$0xff]  ;;  %v62_v11 = vld [vmem:[%s4225_s0 + $0x20] sm:$0xff]  ;;  %v2684_v13 = vpack.c.bf16 %v118_v9, %v114_v8  ;;  %v121_v15 = vld [vmem:[#allocation5 + $0x38] sm:$0xff]  ;;  %s3501_s25 = scalar_lea.vmem %s2583_s1, 128  ;;  %p3506_p3 = scmp.lt.s32.totalorder %s2583_s1, %s2583_s1 }
  0x2a   :  { %v63_v10 = vld [vmem:[%s4225_s0 + $0x28] sm:$0xff]  ;;  %v2682_v12 = vpack.c.bf16 %v119_v7, %v115_v5  ;;  %v116_v16 = vld [vmem:[#allocation5 + $0x10] sm:$0xff]  ;;  %v2714_v17 = vpack.c.bf16 %v121_v15, %v117_v14  ;;  %v122_v23 = vld [vmem:[#allocation5 + $0x40] sm:$0xff]  ;;  %p3502_p2 = scmp.ne.s32.totalorder %s2583_s1, %s3501_s25  ;;  %p3507_p4 = scmp.lt.s32.totalorder %s3501_s25, %s3501_s25 }
  0x2b   :  { %v120_v18 = vld [vmem:[#allocation5 + $0x30] sm:$0xff]  ;;  %v123_v19 = vld [vmem:[#allocation5 + $0x48] sm:$0xff]  ;;  %v126_v24 = vld [vmem:[#allocation5 + $0x60] sm:$0xff] }
  0x2c   :  { %76 = vperm.xlu1 %3357, %v61_v3   ;;  %70 = vperm.xlu0 %3356, %v59_v4   ;;  %v127_v20 = vld [vmem:[#allocation5 + $0x68] sm:$0xff]  ;;  %v2716_v21 = vpack.c.bf16 %v120_v18, %v116_v16  ;;  %v125_v25 = vld [vmem:[#allocation5 + $0x58] sm:$0xff]  ;;  %v2688_v26 = vpack.c.bf16 %v126_v24, %v122_v23  ;;  %v124_v28 = vld [vmem:[#allocation5 + $0x50] sm:$0xff]  ;;  %p3508_p5 = por %p3507_p4, %p3506_p3 }
  0x2d   :  { %2683 = vmatprep.subr.bf16.mxu0 %v2682_v12  ;;  %v2686_v22 = vpack.c.bf16 %v127_v20, %v123_v19  ;;  %2715 = vmatprep.subr.bf16.mxu1 %v2714_v17  ;;  %v129_v27 = vld [vmem:[#allocation5 + $0x78] sm:$0xff]  ;;  %v128_v29 = vld [vmem:[#allocation5 + $0x70] sm:$0xff]  ;;  %v131_v34 = vld [vmem:[#allocation5 + $0x88] sm:$0xff] }
  0x2e   :  { %2685 = vmatpush1.bf16.msra.mxu0 %v2684_v13  ;;  %v65_v30 = vld [vmem:[%s4225_s0 + $0x38] sm:$0xff]  ;;  %v64_v31 = vld [vmem:[%s4225_s0 + $0x30] sm:$0xff]  ;;  %2717 = vmatpush1.bf16.msra.mxu1 %v2716_v21  ;;  %v2718_v32 = vpack.c.bf16 %v129_v27, %v125_v25  ;;  %v2720_v33 = vpack.c.bf16 %v128_v29, %v124_v28  ;;  %v135_v35 = vld [vmem:[#allocation5 + $0xa8] sm:$0xff]  ;;  %p3509_p6 = pnand %p3508_p5, %p3502_p2 }
  0x2f   :  { %2687 = vmatprep.subr.bf16.mxu0 %v2686_v22  ;;  %v130_v36 = vld [vmem:[#allocation5 + $0x80] sm:$0xff]  ;;  %v2690_v37 = vpack.c.bf16 %v135_v35, %v131_v34  ;;  %v133_v39 = vld [vmem:[#allocation5 + $0x98] sm:$0xff]  ;;  %v132_v42 = vld [vmem:[#allocation5 + $0x90] sm:$0xff] }
  0x30   :  { %82 = vperm.xlu1 %3357, %v63_v10   ;;  %79 = vperm.xlu0 %3356, %v62_v11   ;;  %v134_v38 = vld [vmem:[#allocation5 + $0xa0] sm:$0xff]  ;;  %v137_v40 = vld [vmem:[#allocation5 + $0xb8] sm:$0xff]  ;;  %v136_v43 = vld [vmem:[#allocation5 + $0xb0] sm:$0xff] }
  0x31   :  { %2719 = vmatprep.subr.bf16.mxu1 %v2718_v32  ;;  %v2722_v41 = vpack.c.bf16 %v137_v40, %v133_v39  ;;  %v139_v44 = vld [vmem:[#allocation5 + $0xc8] sm:$0xff]  ;;  %v2692_v45 = vpack.c.bf16 %v134_v38, %v130_v36  ;;  %v138_v47 = vld [vmem:[#allocation5 + $0xc0] sm:$0xff]  ;;  %v2724_v49 = vpack.c.bf16 %v136_v43, %v132_v42  ;;  %v141_v51 = vld [vmem:[#allocation5 + $0xd8] sm:$0xff] }
  0x32   :  { %2689 = vmatpush1.bf16.msra.mxu0 %v2688_v26  ;;  %v143_v46 = vld [vmem:[#allocation5 + $0xe8] sm:$0xff]  ;;  %v142_v48 = vld [vmem:[#allocation5 + $0xe0] sm:$0xff]  ;;  %2721 = vmatpush1.bf16.msra.mxu1 %v2720_v33  ;;  %v145_v52 = vld [vmem:[#allocation5 + $0xf8] sm:$0xff] }
  0x33   :  { %2691 = vmatprep.subr.bf16.mxu0 %v2690_v37  ;;  %v2694_v50 = vpack.c.bf16 %v143_v46, %v139_v44  ;;  %v140_v53 = vld [vmem:[#allocation5 + $0xd0] sm:$0xff]  ;;  %v2726_v54 = vpack.c.bf16 %v145_v52, %v141_v51  ;;  %v147_v56 = vld [vmem:[#allocation5 + $0x108] sm:$0xff]  ;;  %2723 = vmatprep.subr.bf16.mxu1 %v2722_v41  ;;  %v149_v58 = vld [vmem:[#allocation5 + $0x118] sm:$0xff]  ;;  %v2696_v59 = vpack.c.bf16 %v142_v48, %v138_v47 }
  0x34   :  { %88 = vperm.xlu1 %3357, %v65_v30   ;;  %85 = vperm.xlu0 %3356, %v64_v31   ;;  %v144_v55 = vld [vmem:[#allocation5 + $0xf0] sm:$0xff]  ;;  %v151_v57 = vld [vmem:[#allocation5 + $0x128] sm:$0xff]  ;;  %v153_v60 = vld [vmem:[#allocation5 + $0x138] sm:$0xff] }
  0x35   :  { %v2728_v61 = vpack.c.bf16 %v144_v55, %v140_v53  ;;  %v2698_v62 = vpack.c.bf16 %v151_v57, %v147_v56  ;;  %v146_v63 = vld [vmem:[#allocation5 + $0x100] sm:$0xff]  ;;  %v148_v1 = vld [vmem:[#allocation5 + $0x110] sm:$0xff]  ;;  %v2730_v2 = vpack.c.bf16 %v153_v60, %v149_v58  ;;  %v155_v4 = vld [vmem:[#allocation5 + $0x148] sm:$0xff] }
  0x36   :  { %2693 = vmatpush1.bf16.msra.mxu0 %v2692_v45  ;;  %2725 = vmatpush1.bf16.msra.mxu1 %v2724_v49  ;;  %v150_v0 = vld [vmem:[#allocation5 + $0x120] sm:$0xff]  ;;  %v152_v3 = vld [vmem:[#allocation5 + $0x130] sm:$0xff]  ;;  %v159_v5 = vld [vmem:[#allocation5 + $0x168] sm:$0xff]  ;;  %v56_v49 = vlaneseq }
  0x37   :  { %2695 = vmatprep.subr.bf16.mxu0 %v2694_v50  ;;  %2727 = vmatprep.subr.bf16.mxu1 %v2726_v54  ;;  %v157_v7 = vld [vmem:[#allocation5 + $0x158] sm:$0xff]  ;;  %v2700_v9 = vpack.c.bf16 %v150_v0, %v146_v63  ;;  %v2732_v10 = vpack.c.bf16 %v152_v3, %v148_v1  ;;  %v2702_v11 = vpack.c.bf16 %v159_v5, %v155_v4  ;;  %v154_v12 = vld [vmem:[#allocation5 + $0x140] sm:$0xff]  ;;  %v156_v14 = vld [vmem:[#allocation5 + $0x150] sm:$0xff]  ;;  %v3535_v5 = vmov 1.0  }
  0x38   :  { %v161_v8 = vld [vmem:[#allocation5 + $0x178] sm:$0xff]  ;;  %v158_v13 = vld [vmem:[#allocation5 + $0x160] sm:$0xff]  ;;  %v160_v16 = vld [vmem:[#allocation5 + $0x170] sm:$0xff]  ;;  %v3636_v54 = vand.u32 127, %v56_v49 }
  0x39   :  { %v2734_v15 = vpack.c.bf16 %v161_v8, %v157_v7  ;;  %v163_v17 = vld [vmem:[#allocation5 + $0x188] sm:$0xff]  ;;  %v165_v19 = vld [vmem:[#allocation5 + $0x198] sm:$0xff]  ;;  %v2704_v21 = vpack.c.bf16 %v158_v13, %v154_v12  ;;  %v2736_v22 = vpack.c.bf16 %v160_v16, %v156_v14  ;;  %v162_v24 = vld [vmem:[#allocation5 + $0x180] sm:$0xff] }
  0x3a   :  { %2697 = vmatpush1.bf16.msra.mxu0 %v2696_v59  ;;  %2729 = vmatpush1.bf16.msra.mxu1 %v2728_v61  ;;  %v167_v18 = vld [vmem:[#allocation5 + $0x1a8] sm:$0xff]  ;;  %v169_v20 = vld [vmem:[#allocation5 + $0x1b8] sm:$0xff]  ;;  %v166_v25 = vld [vmem:[#allocation5 + $0x1a0] sm:$0xff] }
  0x3b   :  { %2699 = vmatprep.subr.bf16.mxu0 %v2698_v62  ;;  %2731 = vmatprep.subr.bf16.mxu1 %v2730_v2  ;;  %v2706_v23 = vpack.c.bf16 %v167_v18, %v163_v17  ;;  %v164_v26 = vld [vmem:[#allocation5 + $0x190] sm:$0xff]  ;;  %v2738_v27 = vpack.c.bf16 %v169_v20, %v165_v19  ;;  %v171_v29 = vld [vmem:[#allocation5 + $0x1c8] sm:$0xff]  ;;  %v173_v31 = vld [vmem:[#allocation5 + $0x1d8] sm:$0xff]  ;;  %v2708_v33 = vpack.c.bf16 %v166_v25, %v162_v24 }
  0x3c   :  { %v168_v28 = vld [vmem:[#allocation5 + $0x1b0] sm:$0xff]  ;;  %v175_v30 = vld [vmem:[#allocation5 + $0x1e8] sm:$0xff]  ;;  %v177_v32 = vld [vmem:[#allocation5 + $0x1f8] sm:$0xff] }
  0x3d   :  { %v2740_v34 = vpack.c.bf16 %v168_v28, %v164_v26  ;;  %v2710_v35 = vpack.c.bf16 %v175_v30, %v171_v29  ;;  %v170_v36 = vld [vmem:[#allocation5 + $0x1c0] sm:$0xff]  ;;  %v172_v38 = vld [vmem:[#allocation5 + $0x1d0] sm:$0xff]  ;;  %v2742_v39 = vpack.c.bf16 %v177_v32, %v173_v31  ;;  %v466_v41 = vld [vmem:[#allocation8 + $0x8] sm:$0xff] }
  0x3e   :  { %2701 = vmatpush1.bf16.msra.mxu0 %v2700_v9  ;;  %2733 = vmatpush1.bf16.msra.mxu1 %v2732_v10  ;;  %v174_v37 = vld [vmem:[#allocation5 + $0x1e0] sm:$0xff]  ;;  %v176_v40 = vld [vmem:[#allocation5 + $0x1f0] sm:$0xff]  ;;  %v470_v42 = vld [vmem:[#allocation8 + $0x28] sm:$0xff] }
  0x3f   :  { %2703 = vmatprep.subr.bf16.mxu0 %v2702_v11  ;;  %2735 = vmatprep.subr.bf16.mxu1 %v2734_v15  ;;  %v468_v43 = vld [vmem:[#allocation8 + $0x18] sm:$0xff]  ;;  %v2712_v45 = vpack.c.bf16 %v174_v37, %v170_v36  ;;  %v2744_v46 = vpack.c.bf16 %v176_v40, %v172_v38  ;;  %v3629_v47 = vpack.c.bf16 %v470_v42, %v466_v41  ;;  %v465_v50 = vld [vmem:[#allocation8] sm:$0xff]  ;;  %v467_v52 = vld [vmem:[#allocation8 + $0x10] sm:$0xff] }
  0x40   :  { %v472_v44 = vld [vmem:[#allocation8 + $0x38] sm:$0xff]  ;;  %v469_v51 = vld [vmem:[#allocation8 + $0x20] sm:$0xff]  ;;  %v471_v53 = vld [vmem:[#allocation8 + $0x30] sm:$0xff] }
  0x41   :  { %v3631_v48 = vpack.c.bf16 %v472_v44, %v468_v43  ;;  %v474_v55 = vld [vmem:[#allocation8 + $0x48] sm:$0xff]  ;;  %v476_v57 = vld [vmem:[#allocation8 + $0x58] sm:$0xff]  ;;  %v3638_v59 = vpack.c.bf16 %v469_v51, %v465_v50  ;;  %v3640_v60 = vpack.c.bf16 %v471_v53, %v467_v52  ;;  %v473_v61 = vld [vmem:[#allocation8 + $0x40] sm:$0xff] }
  0x42   :  { %2705 = vmatpush1.bf16.msra.mxu0 %v2704_v21  ;;  %2737 = vmatpush1.bf16.msra.mxu1 %v2736_v22  ;;  %v478_v56 = vld [vmem:[#allocation8 + $0x68] sm:$0xff]  ;;  %v480_v58 = vld [vmem:[#allocation8 + $0x78] sm:$0xff]  ;;  %v477_v63 = vld [vmem:[#allocation8 + $0x60] sm:$0xff] }
  0x43   :  { %2707 = vmatprep.subr.bf16.mxu0 %v2706_v23  ;;  %2739 = vmatprep.subr.bf16.mxu1 %v2738_v27  ;;  %v475_v0 = vld [vmem:[#allocation8 + $0x50] sm:$0xff]  ;;  %v3643_v2 = vpack.c.bf16 %v478_v56, %v474_v55  ;;  %v3645_v3 = vpack.c.bf16 %v480_v58, %v476_v57  ;;  %v482_v4 = vld [vmem:[#allocation8 + $0x88] sm:$0xff]  ;;  %v484_v8 = vld [vmem:[#allocation8 + $0x98] sm:$0xff]  ;;  %v3651_v10 = vpack.c.bf16 %v477_v63, %v473_v61 }
  0x44   :  { %v479_v1 = vld [vmem:[#allocation8 + $0x70] sm:$0xff]  ;;  %v486_v7 = vld [vmem:[#allocation8 + $0xa8] sm:$0xff]  ;;  %v488_v9 = vld [vmem:[#allocation8 + $0xb8] sm:$0xff] }
  0x45   :  { %v3653_v11 = vpack.c.bf16 %v479_v1, %v475_v0  ;;  %v481_v12 = vld [vmem:[#allocation8 + $0x80] sm:$0xff]  ;;  %v483_v15 = vld [vmem:[#allocation8 + $0x90] sm:$0xff]  ;;  %v3660_v17 = vpack.c.bf16 %v486_v7, %v482_v4  ;;  %v3662_v18 = vpack.c.bf16 %v488_v9, %v484_v8  ;;  %v490_v19 = vld [vmem:[#allocation8 + $0xc8] sm:$0xff] }
  0x46   :  { %2709 = vmatpush1.bf16.msra.mxu0 %v2708_v33  ;;  %2741 = vmatpush1.bf16.msra.mxu1 %v2740_v34  ;;  %v485_v14 = vld [vmem:[#allocation8 + $0xa0] sm:$0xff]  ;;  %v487_v16 = vld [vmem:[#allocation8 + $0xb0] sm:$0xff]  ;;  %v494_v21 = vld [vmem:[#allocation8 + $0xe8] sm:$0xff] }
  0x47   :  { %2711 = vmatprep.subr.bf16.mxu0 %v2710_v35  ;;  %2743 = vmatprep.subr.bf16.mxu1 %v2742_v39  ;;  %v492_v22 = vld [vmem:[#allocation8 + $0xd8] sm:$0xff]  ;;  %v3669_v24 = vpack.c.bf16 %v485_v14, %v481_v12  ;;  %v3671_v25 = vpack.c.bf16 %v487_v16, %v483_v15  ;;  %v489_v26 = vld [vmem:[#allocation8 + $0xc0] sm:$0xff]  ;;  %v491_v28 = vld [vmem:[#allocation8 + $0xd0] sm:$0xff]  ;;  %v3677_v30 = vpack.c.bf16 %v494_v21, %v490_v19 }
  0x48   :  { %v496_v23 = vld [vmem:[#allocation8 + $0xf8] sm:$0xff]  ;;  %v493_v27 = vld [vmem:[#allocation8 + $0xe0] sm:$0xff]  ;;  %v495_v29 = vld [vmem:[#allocation8 + $0xf0] sm:$0xff] }
  0x49   :  { %v3679_v31 = vpack.c.bf16 %v496_v23, %v492_v22  ;;  %v498_v32 = vld [vmem:[#allocation8 + $0x108] sm:$0xff]  ;;  %v500_v34 = vld [vmem:[#allocation8 + $0x118] sm:$0xff]  ;;  %v3689_v36 = vpack.c.bf16 %v493_v27, %v489_v26  ;;  %v3691_v37 = vpack.c.bf16 %v495_v29, %v491_v28  ;;  %v497_v38 = vld [vmem:[#allocation8 + $0x100] sm:$0xff] }
  0x4a   :  { %2713 = vmatpush1.bf16.msra.mxu0 %v2712_v45  ;;  %2745 = vmatpush1.bf16.msra.mxu1 %v2744_v46  ;;  %v502_v33 = vld [vmem:[#allocation8 + $0x128] sm:$0xff]  ;;  %v504_v35 = vld [vmem:[#allocation8 + $0x138] sm:$0xff]  ;;  %v501_v40 = vld [vmem:[#allocation8 + $0x120] sm:$0xff] }
  0x4b   :  { %2747 = vmatprep.subr.bf16.mxu0 %v3629_v47  ;;  %2779 = vmatprep.subr.bf16.mxu1 %v3631_v48  ;;  %v499_v41 = vld [vmem:[#allocation8 + $0x110] sm:$0xff]  ;;  %v3698_v43 = vpack.c.bf16 %v502_v33, %v498_v32  ;;  %v3700_v44 = vpack.c.bf16 %v504_v35, %v500_v34  ;;  %v506_v45 = vld [vmem:[#allocation8 + $0x148] sm:$0xff]  ;;  %v508_v51 = vld [vmem:[#allocation8 + $0x158] sm:$0xff]  ;;  %v3706_v53 = vpack.c.bf16 %v501_v40, %v497_v38 }
  0x4c   :  { %v503_v42 = vld [vmem:[#allocation8 + $0x130] sm:$0xff]  ;;  %v510_v50 = vld [vmem:[#allocation8 + $0x168] sm:$0xff]  ;;  %v512_v52 = vld [vmem:[#allocation8 + $0x178] sm:$0xff] }
  0x4d   :  { %v3708_v55 = vpack.c.bf16 %v503_v42, %v499_v41  ;;  %v505_v56 = vld [vmem:[#allocation8 + $0x140] sm:$0xff]  ;;  %v507_v58 = vld [vmem:[#allocation8 + $0x150] sm:$0xff]  ;;  %v3717_v63 = vpack.c.bf16 %v512_v52, %v508_v51  ;;  %v514_v0 = vld [vmem:[#allocation8 + $0x188] sm:$0xff] }
  0x4e   :  { %v509_v57 = vld [vmem:[#allocation8 + $0x160] sm:$0xff]  ;;  %v511_v61 = vld [vmem:[#allocation8 + $0x170] sm:$0xff]  ;;  %v518_v4 = vld [vmem:[#allocation8 + $0x1a8] sm:$0xff] }
  0x4f   :  { %v516_v7 = vld [vmem:[#allocation8 + $0x198] sm:$0xff]  ;;  %v3723_v9 = vpack.c.bf16 %v509_v57, %v505_v56  ;;  %v3725_v12 = vpack.c.bf16 %v511_v61, %v507_v58  ;;  %v517_v14 = vld [vmem:[#allocation8 + $0x1a0] sm:$0xff]  ;;  %v515_v15 = vld [vmem:[#allocation8 + $0x190] sm:$0xff]  ;;  %v3732_v19 = vpack.c.bf16 %v518_v4, %v514_v0 }
  0x50   :  { %v520_v8 = vld [vmem:[#allocation8 + $0x1b8] sm:$0xff]  ;;  %v519_v16 = vld [vmem:[#allocation8 + $0x1b0] sm:$0xff]  ;;  %v522_v21 = vld [vmem:[#allocation8 + $0x1c8] sm:$0xff] }
  0x51   :  { %v526_v23 = vld [vmem:[#allocation8 + $0x1e8] sm:$0xff]  ;;  %v524_v26 = vld [vmem:[#allocation8 + $0x1d8] sm:$0xff]  ;;  %v3742_v29 = vpack.c.bf16 %v519_v16, %v515_v15  ;;  %v521_v32 = vld [vmem:[#allocation8 + $0x1c0] sm:$0xff] }
  0x52   :  { %v528_v27 = vld [vmem:[#allocation8 + $0x1f8] sm:$0xff]  ;;  %v525_v33 = vld [vmem:[#allocation8 + $0x1e0] sm:$0xff]  ;;  %v523_v34 = vld [vmem:[#allocation8 + $0x1d0] sm:$0xff]  ;;  %v3749_v38 = vpack.c.bf16 %v526_v23, %v522_v21 }
  0x53   :  { %v527_v35 = vld [vmem:[#allocation8 + $0x1f0] sm:$0xff]  ;;  %v3757_v41 = vpack.c.bf16 %v525_v33, %v521_v32 }
  0x54   :  { %v3759_v42 = vpack.c.bf16 %v527_v35, %v523_v34 }
  0xa7   :  { %v68_v62 = vpop.permute.xlu0 %67  ;;  %v74_v20 = vpop.permute.xlu1 %73 }
  0xa8   :  { %vm90_vm0 = vcmp.eq.s32.totalorder %v3636_v54, %v68_v62  ;;  %vm92_vm2 = vcmp.eq.s32.totalorder %v3636_v54, %v74_v20  ;;  %v3715_v62 = vpack.c.bf16 %v510_v50, %v506_v45  ;;  %v3734_v20 = vpack.c.bf16 %v520_v8, %v516_v7  ;;  %v178_v45 = vld [vmem:[%s4228_s3] sm:$0xf] }
  0xa9   :  { %2607 = vmatmul.mubr.msk.f32.vlgmr.msra.gmra.mrb[0].mxu0 %vm90_vm0, %v3535_v5  ;;  %2615 = vmatmul.mubr.msk.f32.vlgmr.msra.gmra.mrb[0].mxu1 %vm90_vm0, %v3535_v5 }
  0xaa   :  { %2749 = vmatpush1.bf16.msra.mxu0 %v3638_v59  ;;  %2781 = vmatpush1.bf16.msra.mxu1 %v3640_v60 }
  0xab   :  { %v71_v13 = vpop.permute.xlu0 %70  ;;  %270 = vmatprep.mubr.f32.mxu0 %v3534_v6  ;;  %383 = vmatprep.mubr.f32.mxu1 %v3534_v6  ;;  %v77_v39 = vpop.permute.xlu1 %76 }
  0xac   :  { %vm91_vm1 = vcmp.eq.s32.totalorder %v3636_v54, %v71_v13  ;;  %2751 = vmatprep.subr.bf16.mxu0 %v3643_v2  ;;  %2783 = vmatprep.subr.bf16.mxu1 %v3645_v3  ;;  %vm93_vm3 = vcmp.eq.s32.totalorder %v3636_v54, %v77_v39  ;;  %v513_v13 = vld [vmem:[#allocation8 + $0x180] sm:$0xff]  ;;  %v3751_v39 = vpack.c.bf16 %v528_v27, %v524_v26 }
  0xad   :  { %2608 = vmatmul.mubr.msk.f32.gmra.mrb[2].mxu0 %vm91_vm1, %v3535_v5  ;;  %2616 = vmatmul.mubr.msk.f32.gmra.mrb[2].mxu1 %vm91_vm1, %v3535_v5  ;;  %v3740_v28 = vpack.c.bf16 %v517_v14, %v513_v13 }
  0xae   :  { %2753 = vmatpush1.bf16.msra.mxu0 %v3651_v10  ;;  %2785 = vmatpush1.bf16.msra.mxu1 %v3653_v11 }
  0xaf   :  { %276 = vmatprep.mubr.f32.mxu0 %v3534_v6  ;;  %389 = vmatprep.mubr.f32.mxu1 %v3534_v6  ;;  %v80_v46 = vpop.permute.xlu0 %79  ;;  %v83_v1 = vpop.permute.xlu1 %82 }
  0xb0   :  { %2755 = vmatprep.subr.bf16.mxu0 %v3660_v17  ;;  %2787 = vmatprep.subr.bf16.mxu1 %v3662_v18  ;;  %vm94_vm4 = vcmp.eq.s32.totalorder %v3636_v54, %v80_v46  ;;  %vm95_vm5 = vcmp.eq.s32.totalorder %v3636_v54, %v83_v1 }
  0xb1   :  { %2609 = vmatmul.mubr.msk.f32.gmra.mrb[4].mxu0 %vm92_vm2, %v3535_v5  ;;  %2617 = vmatmul.mubr.msk.f32.gmra.mrb[4].mxu1 %vm92_vm2, %v3535_v5 }
  0xb2   :  { %2757 = vmatpush1.bf16.msra.mxu0 %v3669_v24  ;;  %2789 = vmatpush1.bf16.msra.mxu1 %v3671_v25 }
  0xb3   :  { %282 = vmatprep.mubr.f32.mxu0 %v3534_v6  ;;  %395 = vmatprep.mubr.f32.mxu1 %v3534_v6  ;;  %v86_v22 = vpop.permute.xlu0 %85  ;;  %v89_v40 = vpop.permute.xlu1 %88 }
  0xb4   :  { %2759 = vmatprep.subr.bf16.mxu0 %v3677_v30  ;;  %2791 = vmatprep.subr.bf16.mxu1 %v3679_v31  ;;  %vm96_vm6 = vcmp.eq.s32.totalorder %v3636_v54, %v86_v22  ;;  %vm97_vm7 = vcmp.eq.s32.totalorder %v3636_v54, %v89_v40  ;;  %v181_v54 = vshrl.u32 %v56_v49, 7  ;;  %v3832_v40 = vld [vmem:[%s4229_s4] ss:$0 sm:$0xff] }
  0xb5   :  { %2610 = vmatmul.mubr.msk.f32.gmra.mrb[6].mxu0 %vm93_vm3, %v3535_v5  ;;  %2618 = vmatmul.mubr.msk.f32.gmra.mrb[6].mxu1 %vm93_vm3, %v3535_v5 }
  0xb6   :  { %2761 = vmatpush1.bf16.msra.mxu0 %v3689_v36  ;;  %2793 = vmatpush1.bf16.msra.mxu1 %v3691_v37  ;;  %v186_v46 = vsub.s32 1, %v181_v54  ;;  %v190_v50 = vsub.s32 2, %v181_v54  ;;  %v194_v1 = vsub.s32 3, %v181_v54 }
  0xb7   :  { %288 = vmatprep.mubr.f32.mxu0 %v3534_v6  ;;  %401 = vmatprep.mubr.f32.mxu1 %v3534_v6 }
  0xb8   :  { %2763 = vmatprep.subr.bf16.mxu0 %v3698_v43  ;;  %2795 = vmatprep.subr.bf16.mxu1 %v3700_v44  ;;  %v3816_v52 = vrot.slane %v178_v45, %v186_v46  ;;  %v3818_v56 = vrot.slane %v178_v45, %v190_v50  ;;  %v3823_v4 = vrot.slane %v178_v45, %v194_v1 }
  0xb9   :  { %2611 = vmatmul.mubr.msk.f32.gmra.mrb[8].mxu0 %vm94_vm4, %v3535_v5  ;;  %2619 = vmatmul.mubr.msk.f32.gmra.mrb[8].mxu1 %vm94_vm4, %v3535_v5 }
  0xba   :  { %2765 = vmatpush1.bf16.msra.mxu0 %v3706_v53  ;;  %2797 = vmatpush1.bf16.msra.mxu1 %v3708_v55 }
  0xbb   :  { %294 = vmatprep.mubr.f32.mxu0 %v3534_v6  ;;  %407 = vmatprep.mubr.f32.mxu1 %v3534_v6 }
  0xbc   :  { %2767 = vmatprep.subr.bf16.mxu0 %v3715_v62  ;;  %2799 = vmatprep.subr.bf16.mxu1 %v3717_v63 }
  0xbd   :  { %2612 = vmatmul.mubr.msk.f32.gmra.mrb[10].mxu0 %vm95_vm5, %v3535_v5  ;;  %2620 = vmatmul.mubr.msk.f32.gmra.mrb[10].mxu1 %vm95_vm5, %v3535_v5 }
  0xbe   :  { %2769 = vmatpush1.bf16.msra.mxu0 %v3723_v9  ;;  %2801 = vmatpush1.bf16.msra.mxu1 %v3725_v12 }
  0xbf   :  { %300 = vmatprep.mubr.f32.mxu0 %v3534_v6  ;;  %413 = vmatprep.mubr.f32.mxu1 %v3534_v6 }
  0xc0   :  { %2771 = vmatprep.subr.bf16.mxu0 %v3732_v19  ;;  %2803 = vmatprep.subr.bf16.mxu1 %v3734_v20 }
  0xc1   :  { %2613 = vmatmul.mubr.msk.f32.gmra.mrb[12].mxu0 %vm96_vm6, %v3535_v5  ;;  %2621 = vmatmul.mubr.msk.f32.gmra.mrb[12].mxu1 %vm96_vm6, %v3535_v5 }
  0xc2   :  { %2773 = vmatpush1.bf16.msra.mxu0 %v3740_v28  ;;  %2805 = vmatpush1.bf16.msra.mxu1 %v3742_v29 }
  0xc3   :  { %306 = vmatprep.mubr.f32.mxu0 %v3534_v6  ;;  %419 = vmatprep.mubr.f32.mxu1 %v3534_v6 }
  0xc4   :  { %2775 = vmatprep.subr.bf16.mxu0 %v3749_v38  ;;  %2807 = vmatprep.subr.bf16.mxu1 %v3751_v39 }
  0xc5   :  { %2614 = vmatmul.mubr.msk.f32.gmra.mrb[14].mxu0 %vm97_vm7, %v3535_v5  ;;  %2622 = vmatmul.mubr.msk.f32.gmra.mrb[14].mxu1 %vm97_vm7, %v3535_v5  ;;  %v182_v5 = vsub.s32 0, %v181_v54 }
  0xc6   :  { %2777 = vmatpush1.bf16.msra.mxu0 %v3757_v41  ;;  %2809 = vmatpush1.bf16.msra.mxu1 %v3759_v42 }
  0xc7   :  { %593 = vmatprep.mubr.f32.mxu0 %v3534_v6  ;;  %664 = vmatprep.mubr.f32.mxu1 %v3534_v6  ;;  %v3814_v51 = vrot.slane %v178_v45, %v182_v5 }
  0xc8   :  { %2811 = vmatprep.subr.bf16.mxu0 %v3629_v47  ;;  %2843 = vmatprep.subr.bf16.mxu1 %v3631_v48 }
  0xc9   :  { %594 = vmatmul.mubr.f32.vlgmr.msra.gmra.mrb[0].mxu0 %v3534_v6  ;;  %665 = vmatmul.mubr.f32.vlgmr.msra.gmra.mrb[0].mxu1 %v3534_v6 }
  0xca   :  { %2813 = vmatpush1.bf16.msra.mxu0 %v3638_v59  ;;  %2845 = vmatpush1.bf16.msra.mxu1 %v3640_v60 }
  0xcb   :  { %2815 = vmatprep.subr.bf16.mxu0 %v3643_v2  ;;  %2847 = vmatprep.subr.bf16.mxu1 %v3645_v3 }
  0xcc   :  { %826 = vmatprep.mubr.f32.mxu0 %v3534_v6  ;;  %897 = vmatprep.mubr.f32.mxu1 %v3534_v6 }
  0xce   :  { %2817 = vmatpush1.bf16.msra.mxu0 %v3651_v10  ;;  %2849 = vmatpush1.bf16.msra.mxu1 %v3653_v11 }
  0xcf   :  { %2819 = vmatprep.subr.bf16.mxu0 %v3660_v17  ;;  %2851 = vmatprep.subr.bf16.mxu1 %v3662_v18 }
  0xd2   :  { %2821 = vmatpush1.bf16.msra.mxu0 %v3669_v24  ;;  %2853 = vmatpush1.bf16.msra.mxu1 %v3671_v25 }
  0xd3   :  { %2823 = vmatprep.subr.bf16.mxu0 %v3677_v30  ;;  %2855 = vmatprep.subr.bf16.mxu1 %v3679_v31 }
  0xd6   :  { %2825 = vmatpush1.bf16.msra.mxu0 %v3689_v36  ;;  %2857 = vmatpush1.bf16.msra.mxu1 %v3691_v37 }
  0xd7   :  { %2827 = vmatprep.subr.bf16.mxu0 %v3698_v43  ;;  %2859 = vmatprep.subr.bf16.mxu1 %v3700_v44 }
  0xda   :  { %2829 = vmatpush1.bf16.msra.mxu0 %v3706_v53  ;;  %2861 = vmatpush1.bf16.msra.mxu1 %v3708_v55 }
  0xdb   :  { %2831 = vmatprep.subr.bf16.mxu0 %v3715_v62  ;;  %2863 = vmatprep.subr.bf16.mxu1 %v3717_v63 }
  0xde   :  { %2833 = vmatpush1.bf16.msra.mxu0 %v3723_v9  ;;  %2865 = vmatpush1.bf16.msra.mxu1 %v3725_v12 }
  0xdf   :  { %2835 = vmatprep.subr.bf16.mxu0 %v3732_v19  ;;  %2867 = vmatprep.subr.bf16.mxu1 %v3734_v20 }
  0xe2   :  { %2837 = vmatpush1.bf16.msra.mxu0 %v3740_v28  ;;  %2869 = vmatpush1.bf16.msra.mxu1 %v3742_v29 }
  0xe3   :  { %2839 = vmatprep.subr.bf16.mxu0 %v3749_v38  ;;  %2871 = vmatprep.subr.bf16.mxu1 %v3751_v39 }
  0xe6   :  { %2841 = vmatpush1.bf16.msra.mxu0 %v3757_v41  ;;  %2873 = vmatpush1.bf16.msra.mxu1 %v3759_v42 }
  0xe7   :  { %2875 = vmatprep.subr.bf16.mxu0 %v3629_v47  ;;  %2907 = vmatprep.subr.bf16.mxu1 %v3631_v48 }
 0x19c   :  { %v595_v57 = vpop.f32.mrb[0].mxu0  ;;  %v666_v58 = vpop.f32.mrb[0].mxu1 }
 0x19d   :  { %v3282_v47 = vadd.f32 %v595_v57, %v3814_v51  ;;  %v597_v48 = vpop.f32.mrb[1].mxu0  ;;  %v668_v61 = vpop.f32.mrb[1].mxu1  ;;  %v3298_v0 = vadd.f32 %v666_v58, %v3818_v56 }
 0x19e   :  { %v3283_v49 = vadd.f32 %v597_v48, %v3816_v52  ;;  %v3299_v7 = vadd.f32 %v668_v61, %v3823_v4 }
 0x19f   :  { %3358 = vtanh.f32 %v3282_v47 }
 0x1a0   :  { %3360 = vtanh.f32 %v3283_v49 }
 0x1a1   :  { %3362 = vtanh.f32 %v3298_v0 }
 0x1a2   :  { %3364 = vtanh.f32 %v3299_v7 }
 0x1a9   :  { %v3359_v8 = vpop.eup %3358 }
 0x1aa   :  { %v679_v13 = vmul.f32 0.5, %v3359_v8  ;;  %v3361_v14 = vpop.eup %3360 }
 0x1ab   :  { %v681_v16 = vmul.f32 0.5, %v3361_v14  ;;  %v3363_v21 = vpop.eup %3362 }
 0x1ac   :  { %v680_v15 = vadd.f32 0.5, %v679_v13  ;;  %v3365_v32 = vpop.eup %3364 }
 0x1ad   :  { %v682_v22 = vadd.f32 0.5, %v681_v16  ;;  %v683_v33 = vmul.f32 0.5, %v3365_v32 }
 0x1ae   :  { %v686_v23 = vmul.f32 %v3363_v21, %v680_v15 }
 0x1af   :  { %v685_v26 = vmul.f32 0.0, %v682_v22  ;;  %v684_v34 = vadd.f32 0.5, %v683_v33  ;;  %v1173_v33 = vld [vmem:[#allocation8 + $0x38] sm:$0xff] }
 0x1b1   :  { %v3826_v27 = vadd.f32 %v686_v23, %v685_v26  ;;  %v1167_v23 = vld [vmem:[#allocation8 + $0x8] sm:$0xff] }
 0x1b2   :  { %v1171_v26 = vld [vmem:[#allocation8 + $0x28] sm:$0xff] }
 0x1b3   :  { %3366 = vtanh.f32 %v3826_v27  ;;  %v3888_v32 = vpack.c.bf16 %v1171_v26, %v1167_v23  ;;  %v1418_v26 = vld [vmem:[#allocation8 + $0x90] sm:$0xff] }
 0x1bd   :  { %v3367_v35 = vpop.eup %3366 }
 0x1be   :  { %v3834_v54 = vmul.f32 %v3367_v35, %v684_v34  ;;  %v1166_v34 = vld [vmem:[#allocation8] sm:$0xff] }
 0x1bf   :  { %v1170_v35 = vld [vmem:[#allocation8 + $0x20] sm:$0xff] }
 0x1c0   :  { %827 = vmatmul.mubr.f32.vlgmr.msra.gmra.mrb[2].mxu0 %v3834_v54  ;;  %898 = vmatmul.mubr.f32.vlgmr.msra.gmra.mrb[2].mxu1 %v3834_v54  ;;  %v2344_v5 = vmul.f32 %v3832_v40, %v3834_v54 }
 0x1c1   :  { %2877 = vmatpush1.bf16.msra.mxu0 %v3638_v59  ;;  %2909 = vmatpush1.bf16.msra.mxu1 %v3640_v60 }
 0x1c2   :  { %2352 = vadd.xlane.f32.xlu0 %v2344_v5  ;;  %2879 = vmatprep.subr.bf16.mxu0 %v3643_v2 }
 0x1c3   :  { %2911 = vmatprep.subr.bf16.mxu1 %v3645_v3  ;;  %1060 = vmatprep.mubr.f32.mxu0 %v3534_v6 }
 0x1c4   :  { %1131 = vmatprep.mubr.f32.mxu1 %v3534_v6 }
 0x1c5   :  { %2881 = vmatpush1.bf16.msra.mxu0 %v3651_v10  ;;  %2913 = vmatpush1.bf16.msra.mxu1 %v3653_v11 }
 0x1c6   :  { %2883 = vmatprep.subr.bf16.mxu0 %v3660_v17  ;;  %2915 = vmatprep.subr.bf16.mxu1 %v3662_v18 }
 0x1c9   :  { %2885 = vmatpush1.bf16.msra.mxu0 %v3669_v24  ;;  %2917 = vmatpush1.bf16.msra.mxu1 %v3671_v25 }
 0x1ca   :  { %2887 = vmatprep.subr.bf16.mxu0 %v3677_v30  ;;  %2919 = vmatprep.subr.bf16.mxu1 %v3679_v31 }
 0x1cd   :  { %2889 = vmatpush1.bf16.msra.mxu0 %v3689_v36  ;;  %2921 = vmatpush1.bf16.msra.mxu1 %v3691_v37 }
 0x1ce   :  { %2891 = vmatprep.subr.bf16.mxu0 %v3698_v43  ;;  %2923 = vmatprep.subr.bf16.mxu1 %v3700_v44 }
 0x1d1   :  { %2893 = vmatpush1.bf16.msra.mxu0 %v3706_v53  ;;  %2925 = vmatpush1.bf16.msra.mxu1 %v3708_v55 }
 0x1d2   :  { %2895 = vmatprep.subr.bf16.mxu0 %v3715_v62  ;;  %2927 = vmatprep.subr.bf16.mxu1 %v3717_v63 }
 0x1d5   :  { %2897 = vmatpush1.bf16.msra.mxu0 %v3723_v9  ;;  %2929 = vmatpush1.bf16.msra.mxu1 %v3725_v12 }
 0x1d6   :  { %2899 = vmatprep.subr.bf16.mxu0 %v3732_v19  ;;  %2931 = vmatprep.subr.bf16.mxu1 %v3734_v20 }
 0x1d9   :  { %2901 = vmatpush1.bf16.msra.mxu0 %v3740_v28  ;;  %2933 = vmatpush1.bf16.msra.mxu1 %v3742_v29 }
 0x1da   :  { %2903 = vmatprep.subr.bf16.mxu0 %v3749_v38  ;;  %2935 = vmatprep.subr.bf16.mxu1 %v3751_v39 }
 0x1dd   :  { %2905 = vmatpush1.bf16.msra.mxu0 %v3757_v41  ;;  %2937 = vmatpush1.bf16.msra.mxu1 %v3759_v42 }
 0x1de   :  { %2939 = vmatprep.subr.bf16.mxu0 %v3888_v32 }
 0x293   :  { %v828_v59 = vpop.f32.mrb[2].mxu0  ;;  %v899_v60 = vpop.f32.mrb[2].mxu1 }
 0x294   :  { %v3284_v2 = vadd.f32 %v828_v59, %v3814_v51  ;;  %v830_v10 = vpop.f32.mrb[3].mxu0  ;;  %v901_v11 = vpop.f32.mrb[3].mxu1  ;;  %v3300_v46 = vadd.f32 %v899_v60, %v3818_v56  ;;  %v3892_v59 = vpack.c.bf16 %v1170_v35, %v1166_v34  ;;  %v1168_v60 = vld [vmem:[#allocation8 + $0x10] sm:$0xff]  ;;  %v1425_v34 = vld [vmem:[#allocation8 + $0xc8] sm:$0xff] }
 0x295   :  { %v3285_v45 = vadd.f32 %v830_v10, %v3816_v52  ;;  %v3301_v50 = vadd.f32 %v901_v11, %v3823_v4  ;;  %v1175_v11 = vld [vmem:[#allocation8 + $0x48] sm:$0xff] }
 0x296   :  { %3368 = vtanh.f32 %v3284_v2  ;;  %v1172_v2 = vld [vmem:[#allocation8 + $0x30] sm:$0xff]  ;;  %v1429_v35 = vld [vmem:[#allocation8 + $0xe8] sm:$0xff] }
 0x297   :  { %3370 = vtanh.f32 %v3285_v45  ;;  %v3895_v10 = vpack.c.bf16 %v1172_v2, %v1168_v60  ;;  %v1179_v45 = vld [vmem:[#allocation8 + $0x68] sm:$0xff]  ;;  %v1427_v60 = vld [vmem:[#allocation8 + $0xd8] sm:$0xff]  ;;  %v3972_v2 = vpack.c.bf16 %v1429_v35, %v1425_v34  ;;  %v1452_v34 = vld [vmem:[#allocation8 + $0x1a0] sm:$0xff] }
 0x298   :  { %3372 = vtanh.f32 %v3300_v46  ;;  %v3900_v46 = vpack.c.bf16 %v1179_v45, %v1175_v11  ;;  %v1431_v11 = vld [vmem:[#allocation8 + $0xf8] sm:$0xff]  ;;  %v1424_v45 = vld [vmem:[#allocation8 + $0xc0] sm:$0xff] }
 0x299   :  { %3374 = vtanh.f32 %v3301_v50  ;;  %v1174_v50 = vld [vmem:[#allocation8 + $0x40] sm:$0xff] }
 0x2a0   :  { %v3369_v57 = vpop.eup %3368 }
 0x2a1   :  { %v912_v58 = vmul.f32 0.5, %v3369_v57  ;;  %v3371_v47 = vpop.eup %3370  ;;  %v1178_v57 = vld [vmem:[#allocation8 + $0x60] sm:$0xff] }
 0x2a2   :  { %v914_v61 = vmul.f32 0.5, %v3371_v47  ;;  %v3373_v49 = vpop.eup %3372  ;;  %v3903_v47 = vpack.c.bf16 %v1178_v57, %v1174_v50  ;;  %v1428_v50 = vld [vmem:[#allocation8 + $0xe0] sm:$0xff]  ;;  %v3974_v57 = vpack.c.bf16 %v1431_v11, %v1427_v60  ;;  %v1450_v11 = vld [vmem:[#allocation8 + $0x190] sm:$0xff] }
 0x2a3   :  { %v913_v48 = vadd.f32 0.5, %v912_v58  ;;  %v3375_v13 = vpop.eup %3374  ;;  %v1176_v58 = vld [vmem:[#allocation8 + $0x50] sm:$0xff] }
 0x2a4   :  { %v915_v0 = vadd.f32 0.5, %v914_v61  ;;  %v916_v14 = vmul.f32 0.5, %v3375_v13 }
 0x2a5   :  { %v919_v1 = vmul.f32 %v3373_v49, %v913_v48  ;;  %v1180_v48 = vld [vmem:[#allocation8 + $0x70] sm:$0xff]  ;;  %v1415_v49 = vld [vmem:[#allocation8 + $0x78] sm:$0xff] }
 0x2a6   :  { %v918_v7 = vmul.f32 %v915_v0, %v3826_v27  ;;  %v917_v15 = vadd.f32 0.5, %v916_v14  ;;  %v1169_v27 = vld [vmem:[#allocation8 + $0x18] sm:$0xff]  ;;  %v3906_v61 = vpack.c.bf16 %v1180_v48, %v1176_v58  ;;  %v3976_v58 = vpack.c.bf16 %v1428_v50, %v1424_v45  ;;  %v1426_v48 = vld [vmem:[#allocation8 + $0xd0] sm:$0xff] }
 0x2a7   :  { %v3890_v5 = vpack.c.bf16 %v1173_v33, %v1169_v27  ;;  %v1423_v14 = vld [vmem:[#allocation8 + $0xb8] sm:$0xff]  ;;  %v1422_v27 = vld [vmem:[#allocation8 + $0xb0] sm:$0xff] }
 0x2a8   :  { %v3877_v8 = vadd.f32 %v919_v1, %v918_v7  ;;  %v1417_v1 = vld [vmem:[#allocation8 + $0x88] sm:$0xff]  ;;  %v3967_v33 = vpack.c.bf16 %v1422_v27, %v1418_v26  ;;  %v1455_v26 = vld [vmem:[#allocation8 + $0x1b8] sm:$0xff]  ;;  %v1448_v27 = vld [vmem:[#allocation8 + $0x180] sm:$0xff] }
 0x2a9   :  { %2971 = vmatprep.subr.bf16.mxu1 %v3890_v5  ;;  %v1421_v7 = vld [vmem:[#allocation8 + $0xa8] sm:$0xff]  ;;  %v4012_v60 = vpack.c.bf16 %v1452_v34, %v1448_v27  ;;  %v1454_v45 = vld [vmem:[#allocation8 + $0x1b0] sm:$0xff] }
 0x2aa   :  { %3376 = vtanh.f32 %v3877_v8  ;;  %v3960_v13 = vpack.c.bf16 %v1421_v7, %v1417_v1  ;;  %v1446_v1 = vld [vmem:[#allocation8 + $0x170] sm:$0xff]  ;;  %v4015_v50 = vpack.c.bf16 %v1454_v45, %v1450_v11 }
 0x2b4   :  { %v3377_v16 = vpop.eup %3376 }
 0x2b5   :  { %v3880_v21 = vmul.f32 %v3377_v16, %v917_v15  ;;  %v1416_v15 = vld [vmem:[#allocation8 + $0x80] sm:$0xff] }
 0x2b6   :  { %v1420_v16 = vld [vmem:[#allocation8 + $0xa0] sm:$0xff] }
 0x2b7   :  { %1061 = vmatmul.mubr.f32.vlgmr.msra.gmra.mrb[4].mxu0 %v3880_v21  ;;  %1132 = vmatmul.mubr.f32.vlgmr.msra.gmra.mrb[4].mxu1 %v3880_v21  ;;  %v2345_v22 = vmul.f32 %v3832_v40, %v3880_v21  ;;  %v3964_v23 = vpack.c.bf16 %v1420_v16, %v1416_v15  ;;  %v1451_v15 = vld [vmem:[#allocation8 + $0x198] sm:$0xff] }
 0x2b8   :  { %1294 = vmatprep.mubr.f32.mxu0 %v3534_v6  ;;  %1365 = vmatprep.mubr.f32.mxu1 %v3534_v6  ;;  %v4010_v35 = vpack.c.bf16 %v1455_v26, %v1451_v15 }
 0x2b9   :  { %2354 = vadd.xlane.f32.xlu1 %v2345_v22  ;;  %2941 = vmatpush1.bf16.msra.mxu0 %v3892_v59 }
 0x2ba   :  { %2973 = vmatpush1.bf16.msra.mxu1 %v3895_v10  ;;  %2943 = vmatprep.subr.bf16.mxu0 %v3900_v46 }
 0x2bb   :  { %2975 = vmatprep.subr.bf16.mxu1 %v3645_v3 }
 0x2bd   :  { %2945 = vmatpush1.bf16.msra.mxu0 %v3903_v47 }
 0x2be   :  { %2977 = vmatpush1.bf16.msra.mxu1 %v3906_v61  ;;  %2947 = vmatprep.subr.bf16.mxu0 %v3660_v17 }
 0x2bf   :  { %2979 = vmatprep.subr.bf16.mxu1 %v3662_v18 }
 0x2c1   :  { %2949 = vmatpush1.bf16.msra.mxu0 %v3669_v24 }
 0x2c2   :  { %2981 = vmatpush1.bf16.msra.mxu1 %v3671_v25  ;;  %2951 = vmatprep.subr.bf16.mxu0 %v3677_v30 }
 0x2c3   :  { %2983 = vmatprep.subr.bf16.mxu1 %v3679_v31 }
 0x2c5   :  { %2953 = vmatpush1.bf16.msra.mxu0 %v3689_v36 }
 0x2c6   :  { %2985 = vmatpush1.bf16.msra.mxu1 %v3691_v37  ;;  %2955 = vmatprep.subr.bf16.mxu0 %v3698_v43 }
 0x2c7   :  { %2987 = vmatprep.subr.bf16.mxu1 %v3700_v44 }
 0x2c9   :  { %2957 = vmatpush1.bf16.msra.mxu0 %v3706_v53 }
 0x2ca   :  { %2989 = vmatpush1.bf16.msra.mxu1 %v3708_v55  ;;  %2959 = vmatprep.subr.bf16.mxu0 %v3715_v62 }
 0x2cb   :  { %2991 = vmatprep.subr.bf16.mxu1 %v3717_v63 }
 0x2cd   :  { %2961 = vmatpush1.bf16.msra.mxu0 %v3723_v9 }
 0x2ce   :  { %2993 = vmatpush1.bf16.msra.mxu1 %v3725_v12  ;;  %2963 = vmatprep.subr.bf16.mxu0 %v3732_v19 }
 0x2cf   :  { %2995 = vmatprep.subr.bf16.mxu1 %v3734_v20 }
 0x2d1   :  { %2965 = vmatpush1.bf16.msra.mxu0 %v3740_v28 }
 0x2d2   :  { %2997 = vmatpush1.bf16.msra.mxu1 %v3742_v29  ;;  %2967 = vmatprep.subr.bf16.mxu0 %v3749_v38 }
 0x2d3   :  { %2999 = vmatprep.subr.bf16.mxu1 %v3751_v39 }
 0x2d5   :  { %2969 = vmatpush1.bf16.msra.mxu0 %v3757_v41 }
 0x2d6   :  { %3001 = vmatpush1.bf16.msra.mxu1 %v3759_v42  ;;  %3003 = vmatprep.subr.bf16.mxu0 %v3888_v32  ;;  %v1411_v42 = vld [vmem:[#allocation8 + $0x58] sm:$0xff] }
 0x2d7   :  { %3035 = vmatprep.subr.bf16.mxu1 %v3890_v5  ;;  %v3956_v0 = vpack.c.bf16 %v1415_v49, %v1411_v42  ;;  %v1442_v49 = vld [vmem:[#allocation8 + $0x150] sm:$0xff] }
 0x2d8   :  { %v4003_v7 = vpack.c.bf16 %v1446_v1, %v1442_v49 }
 0x38a   :  { %v1062_v3 = vpop.f32.mrb[4].mxu0  ;;  %v1133_v17 = vpop.f32.mrb[4].mxu1 }
 0x38b   :  { %v3286_v18 = vadd.f32 %v1062_v3, %v3814_v51  ;;  %v1064_v24 = vpop.f32.mrb[5].mxu0  ;;  %v1135_v25 = vpop.f32.mrb[5].mxu1  ;;  %v3302_v31 = vadd.f32 %v1133_v17, %v3818_v56  ;;  %v1430_v3 = vld [vmem:[#allocation8 + $0xf0] sm:$0xff] }
 0x38c   :  { %v3287_v30 = vadd.f32 %v1064_v24, %v3816_v52  ;;  %v3303_v36 = vadd.f32 %v1135_v25, %v3823_v4  ;;  %v3979_v17 = vpack.c.bf16 %v1430_v3, %v1426_v48  ;;  %v1437_v24 = vld [vmem:[#allocation8 + $0x128] sm:$0xff]  ;;  %v1435_v25 = vld [vmem:[#allocation8 + $0x118] sm:$0xff] }
 0x38d   :  { %3378 = vtanh.f32 %v3286_v18  ;;  %v1433_v18 = vld [vmem:[#allocation8 + $0x108] sm:$0xff] }
 0x38e   :  { %3380 = vtanh.f32 %v3287_v30  ;;  %v3984_v30 = vpack.c.bf16 %v1437_v24, %v1433_v18  ;;  %v1457_v48 = vld [vmem:[#allocation8 + $0x1c8] sm:$0xff]  ;;  %v1459_v18 = vld [vmem:[#allocation8 + $0x1d8] sm:$0xff] }
 0x38f   :  { %3382 = vtanh.f32 %v3302_v31  ;;  %v1439_v31 = vld [vmem:[#allocation8 + $0x138] sm:$0xff]  ;;  %v1461_v3 = vld [vmem:[#allocation8 + $0x1e8] sm:$0xff] }
 0x390   :  { %3384 = vtanh.f32 %v3303_v36  ;;  %v1432_v36 = vld [vmem:[#allocation8 + $0x100] sm:$0xff]  ;;  %v4020_v24 = vpack.c.bf16 %v1461_v3, %v1457_v48 }
 0x397   :  { %v3379_v37 = vpop.eup %3378 }
 0x398   :  { %v1146_v43 = vmul.f32 0.5, %v3379_v37  ;;  %v3381_v44 = vpop.eup %3380  ;;  %v1436_v37 = vld [vmem:[#allocation8 + $0x120] sm:$0xff] }
 0x399   :  { %v1148_v55 = vmul.f32 0.5, %v3381_v44  ;;  %v3383_v62 = vpop.eup %3382  ;;  %v3988_v44 = vpack.c.bf16 %v1436_v37, %v1432_v36  ;;  %v1460_v36 = vld [vmem:[#allocation8 + $0x1e0] sm:$0xff] }
 0x39a   :  { %v1147_v53 = vadd.f32 0.5, %v1146_v43  ;;  %v3385_v20 = vpop.eup %3384  ;;  %v3986_v43 = vpack.c.bf16 %v1439_v31, %v1435_v25  ;;  %v1463_v25 = vld [vmem:[#allocation8 + $0x1f8] sm:$0xff]  ;;  %v1456_v31 = vld [vmem:[#allocation8 + $0x1c0] sm:$0xff] }
 0x39b   :  { %v1149_v63 = vadd.f32 0.5, %v1148_v55  ;;  %v1150_v28 = vmul.f32 0.5, %v3385_v20  ;;  %v1438_v55 = vld [vmem:[#allocation8 + $0x130] sm:$0xff]  ;;  %v4022_v37 = vpack.c.bf16 %v1463_v25, %v1459_v18 }
 0x39c   :  { %v1153_v9 = vmul.f32 %v3383_v62, %v1147_v53  ;;  %v1434_v53 = vld [vmem:[#allocation8 + $0x110] sm:$0xff] }
 0x39d   :  { %v1152_v12 = vmul.f32 %v1149_v63, %v3877_v8  ;;  %v1151_v29 = vadd.f32 0.5, %v1150_v28  ;;  %v1419_v8 = vld [vmem:[#allocation8 + $0x98] sm:$0xff]  ;;  %v3991_v62 = vpack.c.bf16 %v1438_v55, %v1434_v53  ;;  %v1441_v63 = vld [vmem:[#allocation8 + $0x148] sm:$0xff]  ;;  %v4024_v53 = vpack.c.bf16 %v1460_v36, %v1456_v31  ;;  %v1458_v55 = vld [vmem:[#allocation8 + $0x1d0] sm:$0xff] }
 0x39e   :  { %v3962_v22 = vpack.c.bf16 %v1423_v14, %v1419_v8  ;;  %v1447_v28 = vld [vmem:[#allocation8 + $0x178] sm:$0xff]  ;;  %v1449_v8 = vld [vmem:[#allocation8 + $0x188] sm:$0xff] }
 0x39f   :  { %v3941_v19 = vadd.f32 %v1153_v9, %v1152_v12  ;;  %v1445_v9 = vld [vmem:[#allocation8 + $0x168] sm:$0xff]  ;;  %v1443_v12 = vld [vmem:[#allocation8 + $0x158] sm:$0xff] }
 0x3a0   :  { %v3996_v20 = vpack.c.bf16 %v1445_v9, %v1441_v63  ;;  %v1453_v14 = vld [vmem:[#allocation8 + $0x1a8] sm:$0xff]  ;;  %v1462_v63 = vld [vmem:[#allocation8 + $0x1f0] sm:$0xff] }
 0x3a1   :  { %3386 = vtanh.f32 %v3941_v19  ;;  %v4008_v16 = vpack.c.bf16 %v1453_v14, %v1449_v8  ;;  %v4027_v9 = vpack.c.bf16 %v1462_v63, %v1458_v55 }
 0x3ab   :  { %v3387_v38 = vpop.eup %3386 }
 0x3ac   :  { %v3944_v39 = vmul.f32 %v3387_v38, %v1151_v29  ;;  %v1440_v29 = vld [vmem:[#allocation8 + $0x140] sm:$0xff] }
 0x3ad   :  { %v1444_v38 = vld [vmem:[#allocation8 + $0x160] sm:$0xff] }
 0x3ae   :  { %1295 = vmatmul.mubr.f32.vlgmr.msra.gmra.mrb[6].mxu0 %v3944_v39  ;;  %1366 = vmatmul.mubr.f32.vlgmr.msra.gmra.mrb[6].mxu1 %v3944_v39  ;;  %v2346_v41 = vmul.f32 %v3832_v40, %v3944_v39  ;;  %v4000_v42 = vpack.c.bf16 %v1444_v38, %v1440_v29 }
 0x3af   :  { %3005 = vmatpush1.bf16.msra.mxu0 %v3892_v59  ;;  %3037 = vmatpush1.bf16.msra.mxu1 %v3895_v10 }
 0x3b0   :  { %2356 = vadd.xlane.f32.xlu0 %v2346_v41  ;;  %3007 = vmatprep.subr.bf16.mxu0 %v3900_v46  ;;  %v3998_v41 = vpack.c.bf16 %v1447_v28, %v1443_v12 }
 0x3b1   :  { %1528 = vmatprep.mubr.f32.mxu0 %v3534_v6  ;;  %1599 = vmatprep.mubr.f32.mxu1 %v3534_v6 }
 0x3b2   :  { %3039 = vmatprep.subr.bf16.mxu1 %v3956_v0 }
 0x3b3   :  { %3009 = vmatpush1.bf16.msra.mxu0 %v3903_v47  ;;  %3041 = vmatpush1.bf16.msra.mxu1 %v3906_v61 }
 0x3b4   :  { %3011 = vmatprep.subr.bf16.mxu0 %v3960_v13  ;;  %3043 = vmatprep.subr.bf16.mxu1 %v3962_v22 }
 0x3b7   :  { %3013 = vmatpush1.bf16.msra.mxu0 %v3964_v23  ;;  %3045 = vmatpush1.bf16.msra.mxu1 %v3967_v33 }
 0x3b8   :  { %3015 = vmatprep.subr.bf16.mxu0 %v3972_v2  ;;  %3047 = vmatprep.subr.bf16.mxu1 %v3974_v57 }
 0x3bb   :  { %3017 = vmatpush1.bf16.msra.mxu0 %v3976_v58  ;;  %3049 = vmatpush1.bf16.msra.mxu1 %v3979_v17 }
 0x3bc   :  { %3019 = vmatprep.subr.bf16.mxu0 %v3984_v30  ;;  %3051 = vmatprep.subr.bf16.mxu1 %v3986_v43 }
 0x3bf   :  { %3021 = vmatpush1.bf16.msra.mxu0 %v3988_v44  ;;  %3053 = vmatpush1.bf16.msra.mxu1 %v3991_v62 }
 0x3c0   :  { %3023 = vmatprep.subr.bf16.mxu0 %v3996_v20  ;;  %3055 = vmatprep.subr.bf16.mxu1 %v3998_v41 }
 0x3c3   :  { %3025 = vmatpush1.bf16.msra.mxu0 %v4000_v42  ;;  %3057 = vmatpush1.bf16.msra.mxu1 %v4003_v7 }
 0x3c4   :  { %3027 = vmatprep.subr.bf16.mxu0 %v4008_v16  ;;  %3059 = vmatprep.subr.bf16.mxu1 %v4010_v35 }
 0x3c7   :  { %3029 = vmatpush1.bf16.msra.mxu0 %v4012_v60  ;;  %3061 = vmatpush1.bf16.msra.mxu1 %v4015_v50 }
 0x3c8   :  { %3031 = vmatprep.subr.bf16.mxu0 %v4020_v24  ;;  %3063 = vmatprep.subr.bf16.mxu1 %v4022_v37 }
 0x3cb   :  { %3033 = vmatpush1.bf16.msra.mxu0 %v4024_v53  ;;  %3065 = vmatpush1.bf16.msra.mxu1 %v4027_v9 }
 0x3cc   :  { %3067 = vmatprep.subr.bf16.mxu0 %v3888_v32  ;;  %3099 = vmatprep.subr.bf16.mxu1 %v3890_v5 }
 0x481   :  { %v1296_v12 = vpop.f32.mrb[6].mxu0  ;;  %v1367_v28 = vpop.f32.mrb[6].mxu1 }
 0x482   :  { %v3288_v29 = vadd.f32 %v1296_v12, %v3814_v51  ;;  %v1298_v38 = vpop.f32.mrb[7].mxu0  ;;  %v1369_v49 = vpop.f32.mrb[7].mxu1  ;;  %v3304_v8 = vadd.f32 %v1367_v28, %v3818_v56 }
 0x483   :  { %v3289_v1 = vadd.f32 %v1298_v38, %v3816_v52  ;;  %v3305_v14 = vadd.f32 %v1369_v49, %v3823_v4 }
 0x484   :  { %3388 = vtanh.f32 %v3288_v29 }
 0x485   :  { %3390 = vtanh.f32 %v3289_v1 }
 0x486   :  { %3392 = vtanh.f32 %v3304_v8 }
 0x487   :  { %3394 = vtanh.f32 %v3305_v14 }
 0x48e   :  { %v3389_v15 = vpop.eup %3388 }
 0x48f   :  { %v1380_v26 = vmul.f32 0.5, %v3389_v15  ;;  %v3391_v27 = vpop.eup %3390 }
 0x490   :  { %v1382_v11 = vmul.f32 0.5, %v3391_v27  ;;  %v3393_v45 = vpop.eup %3392 }
 0x491   :  { %v1381_v34 = vadd.f32 0.5, %v1380_v26  ;;  %v3395_v31 = vpop.eup %3394 }
 0x492   :  { %v1383_v48 = vadd.f32 0.5, %v1382_v11  ;;  %v1384_v36 = vmul.f32 0.5, %v3395_v31 }
 0x493   :  { %v1387_v3 = vmul.f32 %v3393_v45, %v1381_v34 }
 0x494   :  { %v1386_v18 = vmul.f32 %v1383_v48, %v3941_v19  ;;  %v1385_v55 = vadd.f32 0.5, %v1384_v36 }
 0x496   :  { %v4039_v25 = vadd.f32 %v1387_v3, %v1386_v18 }
 0x498   :  { %3396 = vtanh.f32 %v4039_v25 }
 0x4a2   :  { %v3397_v63 = vpop.eup %3396 }
 0x4a3   :  { %v4042_v12 = vmul.f32 %v3397_v63, %v1385_v55 }
 0x4a5   :  { %1529 = vmatmul.mubr.f32.vlgmr.msra.gmra.mrb[8].mxu0 %v4042_v12  ;;  %1600 = vmatmul.mubr.f32.vlgmr.msra.gmra.mrb[8].mxu1 %v4042_v12  ;;  %v2347_v28 = vmul.f32 %v3832_v40, %v4042_v12 }
 0x4a6   :  { %3069 = vmatpush1.bf16.msra.mxu0 %v3892_v59  ;;  %3101 = vmatpush1.bf16.msra.mxu1 %v3895_v10 }
 0x4a7   :  { %2358 = vadd.xlane.f32.xlu0 %v2347_v28  ;;  %3071 = vmatprep.subr.bf16.mxu0 %v3900_v46 }
 0x4a8   :  { %3103 = vmatprep.subr.bf16.mxu1 %v3956_v0  ;;  %1762 = vmatprep.mubr.f32.mxu0 %v3534_v6 }
 0x4a9   :  { %1833 = vmatprep.mubr.f32.mxu1 %v3534_v6 }
 0x4aa   :  { %3073 = vmatpush1.bf16.msra.mxu0 %v3903_v47  ;;  %3105 = vmatpush1.bf16.msra.mxu1 %v3906_v61 }
 0x4ab   :  { %3075 = vmatprep.subr.bf16.mxu0 %v3960_v13  ;;  %3107 = vmatprep.subr.bf16.mxu1 %v3962_v22 }
 0x4ae   :  { %3077 = vmatpush1.bf16.msra.mxu0 %v3964_v23  ;;  %3109 = vmatpush1.bf16.msra.mxu1 %v3967_v33 }
 0x4af   :  { %3079 = vmatprep.subr.bf16.mxu0 %v3972_v2  ;;  %3111 = vmatprep.subr.bf16.mxu1 %v3974_v57 }
 0x4b2   :  { %3081 = vmatpush1.bf16.msra.mxu0 %v3976_v58  ;;  %3113 = vmatpush1.bf16.msra.mxu1 %v3979_v17 }
 0x4b3   :  { %3083 = vmatprep.subr.bf16.mxu0 %v3984_v30  ;;  %3115 = vmatprep.subr.bf16.mxu1 %v3986_v43 }
 0x4b6   :  { %3085 = vmatpush1.bf16.msra.mxu0 %v3988_v44  ;;  %3117 = vmatpush1.bf16.msra.mxu1 %v3991_v62 }
 0x4b7   :  { %3087 = vmatprep.subr.bf16.mxu0 %v3996_v20  ;;  %3119 = vmatprep.subr.bf16.mxu1 %v3998_v41 }
 0x4ba   :  { %3089 = vmatpush1.bf16.msra.mxu0 %v4000_v42  ;;  %3121 = vmatpush1.bf16.msra.mxu1 %v4003_v7 }
 0x4bb   :  { %3091 = vmatprep.subr.bf16.mxu0 %v4008_v16  ;;  %3123 = vmatprep.subr.bf16.mxu1 %v4010_v35 }
 0x4be   :  { %3093 = vmatpush1.bf16.msra.mxu0 %v4012_v60  ;;  %3125 = vmatpush1.bf16.msra.mxu1 %v4015_v50 }
 0x4bf   :  { %3095 = vmatprep.subr.bf16.mxu0 %v4020_v24  ;;  %3127 = vmatprep.subr.bf16.mxu1 %v4022_v37 }
 0x4c2   :  { %3097 = vmatpush1.bf16.msra.mxu0 %v4024_v53  ;;  %3129 = vmatpush1.bf16.msra.mxu1 %v4027_v9 }
 0x4c3   :  { %3131 = vmatprep.subr.bf16.mxu0 %v3888_v32  ;;  %3163 = vmatprep.subr.bf16.mxu1 %v3890_v5 }
 0x578   :  { %v1530_v19 = vpop.f32.mrb[8].mxu0  ;;  %v1601_v29 = vpop.f32.mrb[8].mxu1 }
 0x579   :  { %v3290_v38 = vadd.f32 %v1530_v19, %v3814_v51  ;;  %v1532_v49 = vpop.f32.mrb[9].mxu0  ;;  %v1603_v1 = vpop.f32.mrb[9].mxu1  ;;  %v3306_v14 = vadd.f32 %v1601_v29, %v3818_v56 }
 0x57a   :  { %v3291_v8 = vadd.f32 %v1532_v49, %v3816_v52  ;;  %v3307_v15 = vadd.f32 %v1603_v1, %v3823_v4 }
 0x57b   :  { %3398 = vtanh.f32 %v3290_v38 }
 0x57c   :  { %3400 = vtanh.f32 %v3291_v8 }
 0x57d   :  { %3402 = vtanh.f32 %v3306_v14 }
 0x57e   :  { %3404 = vtanh.f32 %v3307_v15 }
 0x585   :  { %v3399_v26 = vpop.eup %3398 }
 0x586   :  { %v1614_v27 = vmul.f32 0.5, %v3399_v26  ;;  %v3401_v32 = vpop.eup %3400 }
 0x587   :  { %v1616_v5 = vmul.f32 0.5, %v3401_v32  ;;  %v3403_v11 = vpop.eup %3402 }
 0x588   :  { %v1615_v34 = vadd.f32 0.5, %v1614_v27  ;;  %v3405_v31 = vpop.eup %3404 }
 0x589   :  { %v1617_v45 = vadd.f32 0.5, %v1616_v5  ;;  %v1618_v36 = vmul.f32 0.5, %v3405_v31 }
 0x58a   :  { %v1621_v48 = vmul.f32 %v3403_v11, %v1615_v34 }
 0x58b   :  { %v1620_v3 = vmul.f32 %v1617_v45, %v4039_v25  ;;  %v1619_v55 = vadd.f32 0.5, %v1618_v36 }
 0x58d   :  { %v4087_v18 = vadd.f32 %v1621_v48, %v1620_v3 }
 0x58f   :  { %3406 = vtanh.f32 %v4087_v18 }
 0x599   :  { %v3407_v63 = vpop.eup %3406 }
 0x59a   :  { %v4090_v28 = vmul.f32 %v3407_v63, %v1619_v55  ;;  %v2107_v55 = vld [vmem:[#allocation8 + $0x28] sm:$0xff]  ;;  %v2105_v63 = vld [vmem:[#allocation8 + $0x18] sm:$0xff] }
 0x59c   :  { %1763 = vmatmul.mubr.f32.vlgmr.msra.gmra.mrb[10].mxu0 %v4090_v28  ;;  %1834 = vmatmul.mubr.f32.vlgmr.msra.gmra.mrb[10].mxu1 %v4090_v28  ;;  %v2348_v19 = vmul.f32 %v3832_v40, %v4090_v28 }
 0x59d   :  { %3133 = vmatpush1.bf16.msra.mxu0 %v3892_v59  ;;  %3165 = vmatpush1.bf16.msra.mxu1 %v3895_v10 }
 0x59e   :  { %2360 = vadd.xlane.f32.xlu1 %v2348_v19  ;;  %3135 = vmatprep.subr.bf16.mxu0 %v3900_v46 }
 0x59f   :  { %3167 = vmatprep.subr.bf16.mxu1 %v3956_v0  ;;  %1996 = vmatprep.mubr.f32.mxu0 %v3534_v6 }
 0x5a0   :  { %2067 = vmatprep.mubr.f32.mxu1 %v3534_v6 }
 0x5a1   :  { %3137 = vmatpush1.bf16.msra.mxu0 %v3903_v47  ;;  %3169 = vmatpush1.bf16.msra.mxu1 %v3906_v61 }
 0x5a2   :  { %3139 = vmatprep.subr.bf16.mxu0 %v3960_v13  ;;  %3171 = vmatprep.subr.bf16.mxu1 %v3962_v22 }
 0x5a5   :  { %3141 = vmatpush1.bf16.msra.mxu0 %v3964_v23  ;;  %3173 = vmatpush1.bf16.msra.mxu1 %v3967_v33 }
 0x5a6   :  { %3143 = vmatprep.subr.bf16.mxu0 %v3972_v2  ;;  %3175 = vmatprep.subr.bf16.mxu1 %v3974_v57 }
 0x5a9   :  { %3145 = vmatpush1.bf16.msra.mxu0 %v3976_v58  ;;  %3177 = vmatpush1.bf16.msra.mxu1 %v3979_v17 }
 0x5aa   :  { %3147 = vmatprep.subr.bf16.mxu0 %v3984_v30  ;;  %3179 = vmatprep.subr.bf16.mxu1 %v3986_v43 }
 0x5ad   :  { %3149 = vmatpush1.bf16.msra.mxu0 %v3988_v44  ;;  %3181 = vmatpush1.bf16.msra.mxu1 %v3991_v62 }
 0x5ae   :  { %3151 = vmatprep.subr.bf16.mxu0 %v3996_v20  ;;  %3183 = vmatprep.subr.bf16.mxu1 %v3998_v41 }
 0x5b1   :  { %3153 = vmatpush1.bf16.msra.mxu0 %v4000_v42  ;;  %3185 = vmatpush1.bf16.msra.mxu1 %v4003_v7 }
 0x5b2   :  { %3155 = vmatprep.subr.bf16.mxu0 %v4008_v16  ;;  %3187 = vmatprep.subr.bf16.mxu1 %v4010_v35 }
 0x5b5   :  { %3157 = vmatpush1.bf16.msra.mxu0 %v4012_v60  ;;  %3189 = vmatpush1.bf16.msra.mxu1 %v4015_v50 }
 0x5b6   :  { %3159 = vmatprep.subr.bf16.mxu0 %v4020_v24  ;;  %3191 = vmatprep.subr.bf16.mxu1 %v4022_v37 }
 0x5b9   :  { %3161 = vmatpush1.bf16.msra.mxu0 %v4024_v53  ;;  %3193 = vmatpush1.bf16.msra.mxu1 %v4027_v9 }
 0x66f   :  { %v1764_v59 = vpop.f32.mrb[10].mxu0  ;;  %v1835_v10 = vpop.f32.mrb[10].mxu1 }
 0x670   :  { %v3292_v46 = vadd.f32 %v1764_v59, %v3814_v51  ;;  %v1766_v47 = vpop.f32.mrb[11].mxu0  ;;  %v1837_v61 = vpop.f32.mrb[11].mxu1  ;;  %v3308_v29 = vadd.f32 %v1835_v10, %v3818_v56  ;;  %v2109_v59 = vld [vmem:[#allocation8 + $0x38] sm:$0xff]  ;;  %v2102_v10 = vld [vmem:[#allocation8] sm:$0xff] }
 0x671   :  { %v3293_v25 = vadd.f32 %v1766_v47, %v3816_v52  ;;  %v3309_v38 = vadd.f32 %v1837_v61, %v3823_v4  ;;  %v3226_v47 = vpack.c.bf16 %v2109_v59, %v2105_v63 }
 0x672   :  { %3408 = vtanh.f32 %v3292_v46  ;;  %v2106_v46 = vld [vmem:[#allocation8 + $0x20] sm:$0xff] }
 0x673   :  { %3410 = vtanh.f32 %v3293_v25  ;;  %v3196_v61 = vpack.c.bf16 %v2106_v46, %v2102_v10  ;;  %v2104_v25 = vld [vmem:[#allocation8 + $0x10] sm:$0xff]  ;;  %3227 = vmatprep.subr.bf16.mxu1 %v3226_v47 }
 0x674   :  { %3412 = vtanh.f32 %v3308_v29  ;;  %v2108_v29 = vld [vmem:[#allocation8 + $0x30] sm:$0xff] }
 0x675   :  { %3414 = vtanh.f32 %v3309_v38  ;;  %v3228_v38 = vpack.c.bf16 %v2108_v29, %v2104_v25 }
 0x67c   :  { %v3409_v49 = vpop.eup %3408 }
 0x67d   :  { %v1848_v1 = vmul.f32 0.5, %v3409_v49  ;;  %v3411_v8 = vpop.eup %3410  ;;  %v2115_v49 = vld [vmem:[#allocation8 + $0x68] sm:$0xff] }
 0x67e   :  { %v1850_v15 = vmul.f32 0.5, %v3411_v8  ;;  %v3413_v26 = vpop.eup %3412  ;;  %v2110_v8 = vld [vmem:[#allocation8 + $0x40] sm:$0xff] }
 0x67f   :  { %v1849_v14 = vadd.f32 0.5, %v1848_v1  ;;  %v3415_v11 = vpop.eup %3414 }
 0x680   :  { %v1851_v27 = vadd.f32 0.5, %v1850_v15  ;;  %v1852_v45 = vmul.f32 0.5, %v3415_v11  ;;  %v2112_v15 = vld [vmem:[#allocation8 + $0x50] sm:$0xff] }
 0x681   :  { %v1855_v32 = vmul.f32 %v3413_v26, %v1849_v14  ;;  %v2114_v14 = vld [vmem:[#allocation8 + $0x60] sm:$0xff] }
 0x682   :  { %v1854_v34 = vmul.f32 %v1851_v27, %v4087_v18  ;;  %v1853_v48 = vadd.f32 0.5, %v1852_v45  ;;  %v2103_v18 = vld [vmem:[#allocation8 + $0x8] sm:$0xff]  ;;  %v3200_v26 = vpack.c.bf16 %v2114_v14, %v2110_v8  ;;  %v2116_v27 = vld [vmem:[#allocation8 + $0x70] sm:$0xff]  ;;  %v2355_v14 = vpop.xlane.xlu1 %2354 }
 0x683   :  { %v3194_v19 = vpack.c.bf16 %v2107_v55, %v2103_v18 }
 0x684   :  { %v4133_v5 = vadd.f32 %v1855_v32, %v1854_v34  ;;  %v3232_v32 = vpack.c.bf16 %v2116_v27, %v2112_v15 }
 0x685   :  { %3195 = vmatprep.subr.bf16.mxu0 %v3194_v19 }
 0x686   :  { %3416 = vtanh.f32 %v4133_v5 }
 0x690   :  { %v3417_v3 = vpop.eup %3416 }
 0x691   :  { %v4136_v31 = vmul.f32 %v3417_v3, %v1853_v48 }
 0x693   :  { %1997 = vmatmul.mubr.f32.vlgmr.msra.gmra.mrb[12].mxu0 %v4136_v31  ;;  %2068 = vmatmul.mubr.f32.vlgmr.msra.gmra.mrb[12].mxu1 %v4136_v31  ;;  %v2349_v36 = vmul.f32 %v3832_v40, %v4136_v31  ;;  %v2111_v40 = vld [vmem:[#allocation8 + $0x48] sm:$0xff] }
 0x694   :  { %2230 = vmatprep.mubr.f32.mxu0 %v3534_v6  ;;  %2301 = vmatprep.mubr.f32.mxu1 %v3534_v6  ;;  %v3198_v1 = vpack.c.bf16 %v2115_v49, %v2111_v40  ;;  %v3536_v49 = vmov 0.0|0.0  }
 0x695   :  { %2362 = vadd.xlane.f32.xlu0 %v2349_v36  ;;  %3197 = vmatpush1.bf16.msra.mxu0 %v3196_v61 }
 0x696   :  { %3229 = vmatpush1.bf16.msra.mxu1 %v3228_v38  ;;  %3199 = vmatprep.subr.bf16.mxu0 %v3198_v1  ;;  %v2353_v1 = vpop.xlane.xlu0 %2352 }
 0x697   :  { %3231 = vmatprep.subr.bf16.mxu1 %v3956_v0 }
 0x699   :  { %3201 = vmatpush1.bf16.msra.mxu0 %v3200_v26  ;;  %v2361_v26 = vpop.xlane.xlu1 %2360 }
 0x69a   :  { %3233 = vmatpush1.bf16.msra.mxu1 %v3232_v32  ;;  %3203 = vmatprep.subr.bf16.mxu0 %v3960_v13  ;;  %v2357_v8 = vpop.xlane.xlu0 %2356  ;;  %v2369_v32 = vstv %s4230_s5 }
 0x69b   :  { %3235 = vmatprep.subr.bf16.mxu1 %v3962_v22 }
 0x69d   :  { %3205 = vmatpush1.bf16.msra.mxu0 %v3964_v23 }
 0x69e   :  { %3237 = vmatpush1.bf16.msra.mxu1 %v3967_v33  ;;  %3207 = vmatprep.subr.bf16.mxu0 %v3972_v2  ;;  %v2359_v15 = vpop.xlane.xlu0 %2358 }
 0x69f   :  { %3239 = vmatprep.subr.bf16.mxu1 %v3974_v57 }
 0x6a1   :  { %3209 = vmatpush1.bf16.msra.mxu0 %v3976_v58 }
 0x6a2   :  { %3241 = vmatpush1.bf16.msra.mxu1 %v3979_v17  ;;  %3211 = vmatprep.subr.bf16.mxu0 %v3984_v30 }
 0x6a3   :  { %3243 = vmatprep.subr.bf16.mxu1 %v3986_v43 }
 0x6a5   :  { %3213 = vmatpush1.bf16.msra.mxu0 %v3988_v44 }
 0x6a6   :  { %3245 = vmatpush1.bf16.msra.mxu1 %v3991_v62  ;;  %3215 = vmatprep.subr.bf16.mxu0 %v3996_v20 }
 0x6a7   :  { %3247 = vmatprep.subr.bf16.mxu1 %v3998_v41 }
 0x6a9   :  { %3217 = vmatpush1.bf16.msra.mxu0 %v4000_v42 }
 0x6aa   :  { %3249 = vmatpush1.bf16.msra.mxu1 %v4003_v7  ;;  %3219 = vmatprep.subr.bf16.mxu0 %v4008_v16 }
 0x6ab   :  { %3251 = vmatprep.subr.bf16.mxu1 %v4010_v35 }
 0x6ad   :  { %3221 = vmatpush1.bf16.msra.mxu0 %v4012_v60 }
 0x6ae   :  { %3253 = vmatpush1.bf16.msra.mxu1 %v4015_v50  ;;  %3223 = vmatprep.subr.bf16.mxu0 %v4020_v24 }
 0x6af   :  { %3255 = vmatprep.subr.bf16.mxu1 %v4022_v37 }
 0x6b1   :  { %3225 = vmatpush1.bf16.msra.mxu0 %v4024_v53  ;;  %v3456_v53 = vld [vmem:[%s4229_s4] ss:$0 sm:$0xff] }
 0x6b2   :  { %3257 = vmatpush1.bf16.msra.mxu1 %v4027_v9  ;;  %3258 = vmatprep.subr.bf16.mxu0 %v3536_v49 }
 0x6b3   :  { %3270 = vmatprep.subr.bf16.mxu1 %v3536_v49 }
 0x722   :  { %v2363_v27 = vpop.xlane.xlu0 %2362 }
 0x766   :  { %v1998_v0 = vpop.f32.mrb[12].mxu0  ;;  %v2069_v13 = vpop.f32.mrb[12].mxu1 }
 0x767   :  { %v3294_v22 = vadd.f32 %v1998_v0, %v3814_v51  ;;  %v2000_v23 = vpop.f32.mrb[13].mxu0  ;;  %v2071_v33 = vpop.f32.mrb[13].mxu1  ;;  %v3310_v57 = vadd.f32 %v2069_v13, %v3818_v56  ;;  %v2375_v13 = vadd.f32 %v2369_v32, %v2363_v27 }
 0x768   :  { %v3295_v2 = vadd.f32 %v2000_v23, %v3816_v52  ;;  %v3311_v58 = vadd.f32 %v2071_v33, %v3823_v4  ;;  %v2374_v23 = vadd.f32 %v2369_v32, %v2361_v26 }
 0x769   :  { %3418 = vtanh.f32 %v3294_v22  ;;  %v2371_v22 = vadd.f32 %v2369_v32, %v2355_v14 }
 0x76a   :  { %3420 = vtanh.f32 %v3295_v2  ;;  %v2370_v2 = vadd.f32 %v2369_v32, %v2353_v1 }
 0x76b   :  { %3422 = vtanh.f32 %v3310_v57 }
 0x76c   :  { %3424 = vtanh.f32 %v3311_v58  ;;  %v2372_v58 = vadd.f32 %v2369_v32, %v2357_v8 }
 0x773   :  { %v3419_v17 = vpop.eup %3418 }
 0x774   :  { %v2082_v30 = vmul.f32 0.5, %v3419_v17  ;;  %v3421_v43 = vpop.eup %3420  ;;  %v2373_v17 = vadd.f32 %v2369_v32, %v2359_v15 }
 0x775   :  { %v2084_v62 = vmul.f32 0.5, %v3421_v43  ;;  %v3423_v20 = vpop.eup %3422  ;;  %v2378_v43 = vmax.f32 %v2370_v2, %v2374_v23 }
 0x776   :  { %v2083_v44 = vadd.f32 0.5, %v2082_v30  ;;  %v3425_v35 = vpop.eup %3424 }
 0x777   :  { %v2085_v41 = vadd.f32 0.5, %v2084_v62  ;;  %v2086_v60 = vmul.f32 0.5, %v3425_v35 }
 0x778   :  { %v2089_v42 = vmul.f32 %v3423_v20, %v2083_v44 }
 0x779   :  { %v2088_v7 = vmul.f32 %v2085_v41, %v4133_v5  ;;  %v2087_v50 = vadd.f32 0.5, %v2086_v60 }
 0x77b   :  { %v2090_v16 = vadd.f32 %v2089_v42, %v2088_v7 }
 0x77d   :  { %3426 = vtanh.f32 %v2090_v16 }
 0x787   :  { %v3427_v24 = vpop.eup %3426 }
 0x788   :  { %v4174_v37 = vmul.f32 %v3427_v24, %v2087_v50 }
 0x78a   :  { %2231 = vmatmul.mubr.f32.vlgmr.msra.gmra.mrb[14].mxu0 %v4174_v37  ;;  %2302 = vmatmul.mubr.f32.vlgmr.msra.gmra.mrb[14].mxu1 %v4174_v37  ;;  %v2350_v9 = vmul.f32 %v3456_v53, %v4174_v37 }
 0x78b   :  { %2679 = vmatprep.mubr.msk.f32.mxu1 %vm3537_vm8, %v3534_v6  ;;  %2660 = vmatprep.mubr.msk.f32.mxu0 %vm3537_vm8, %v3534_v6  ;;  %v2379_v6 = vmax.f32 %v2371_v22, %v2375_v13 }
 0x78c   :  { %2364 = vadd.xlane.f32.xlu1 %v2350_v9 }
 0x78d   :  { %v2382_v20 = vmax.f32 %v2378_v43, %v2379_v6 }
 0x819   :  { %v2365_v0 = vpop.xlane.xlu1 %2364 }
 0x81a   :  { %v2376_v33 = vadd.f32 %v2369_v32, %v2365_v0 }
 0x81c   :  { %v2380_v44 = vmax.f32 %v2372_v58, %v2376_v33 }
 0x85d   :  { %v2232_v34 = vpop.f32.mrb[14].mxu0  ;;  %v2303_v5 = vpop.f32.mrb[14].mxu1 }
 0x85e   :  { %v3296_v11 = vadd.f32 %v2232_v34, %v3814_v51  ;;  %v2234_v45 = vpop.f32.mrb[15].mxu0  ;;  %v2305_v48 = vpop.f32.mrb[15].mxu1  ;;  %v3312_v36 = vadd.f32 %v2303_v5, %v3818_v56 }
 0x85f   :  { %v3297_v3 = vadd.f32 %v2234_v45, %v3816_v52  ;;  %v3313_v18 = vadd.f32 %v2305_v48, %v3823_v4 }
 0x860   :  { %3428 = vtanh.f32 %v3296_v11 }
 0x861   :  { %3430 = vtanh.f32 %v3297_v3 }
 0x862   :  { %3432 = vtanh.f32 %v3312_v36 }
 0x863   :  { %3434 = vtanh.f32 %v3313_v18 }
 0x86a   :  { %v3429_v55 = vpop.eup %3428 }
 0x86b   :  { %v2316_v63 = vmul.f32 0.5, %v3429_v55  ;;  %v3431_v19 = vpop.eup %3430 }
 0x86c   :  { %v2318_v10 = vmul.f32 0.5, %v3431_v19  ;;  %v3433_v46 = vpop.eup %3432 }
 0x86d   :  { %v2317_v59 = vadd.f32 0.5, %v2316_v63  ;;  %v3435_v52 = vpop.eup %3434 }
 0x86e   :  { %v2319_v47 = vadd.f32 0.5, %v2318_v10  ;;  %v2320_v29 = vmul.f32 0.5, %v3435_v52 }
 0x86f   :  { %v2323_v51 = vmul.f32 %v3433_v46, %v2317_v59 }
 0x870   :  { %v2322_v61 = vmul.f32 %v2319_v47, %v2090_v16  ;;  %v2321_v38 = vadd.f32 0.5, %v2320_v29 }
 0x872   :  { %v2324_v25 = vadd.f32 %v2323_v51, %v2322_v61 }
 0x874   :  { %3436 = vtanh.f32 %v2324_v25 }
 0x87e   :  { %v3437_v56 = vpop.eup %3436 }
 0x87f   :  { %v4186_v40 = vmul.f32 %v3437_v56, %v2321_v38 }
 0x881   :  { %v2351_v4 = vmul.f32 %v3456_v53, %v4186_v40 }
 0x883   :  { %2366 = vadd.xlane.f32.xlu0 %v2351_v4 }
 0x910   :  { %v2367_v57 = vpop.xlane.xlu0 %2366 }
 0x911   :  { %v2377_v30 = vadd.f32 %v2369_v32, %v2367_v57 }
 0x913   :  { %v2381_v62 = vmax.f32 %v2373_v17, %v2377_v30 }
 0x915   :  { %v2383_v41 = vmax.f32 %v2380_v44, %v2381_v62 }
 0x917   :  { %v2384_v42 = vmax.f32 %v2382_v20, %v2383_v41 }
 0x919   :  { %v2385_v7 = vrot.slane %v2384_v42, 4 }
 0x91b   :  { %v2386_v16 = vmax.f32 %v2384_v42, %v2385_v7 }
 0x91d   :  { %v2387_v35 = vrot.slane %v2386_v16, 2 }
 0x91f   :  { %v2388_v60 = vmax.f32 %v2386_v16, %v2387_v35 }
 0x921   :  { %v2389_v50 = vrot.slane %v2388_v60, 1 }
 0x923   :  { %v2390_v24 = vmax.f32 %v2388_v60, %v2389_v50 }
 0x925   :  { %v2391_v53 = vsub.f32 %v2370_v2, %v2390_v24  ;;  %v2392_v9 = vsub.f32 %v2371_v22, %v2390_v24  ;;  %v2393_v34 = vsub.f32 %v2372_v58, %v2390_v24  ;;  %v2394_v5 = vsub.f32 %v2373_v17, %v2390_v24 }
 0x926   :  { %v2395_v11 = vsub.f32 %v2374_v23, %v2390_v24  ;;  %v2396_v3 = vsub.f32 %v2375_v13, %v2390_v24  ;;  %v2398_v55 = vsub.f32 %v2377_v30, %v2390_v24  ;;  %v2397_v59 = vsub.f32 %v2376_v33, %v2390_v24 }
 0x927   :  { %v2399_v45 = vmul.f32 1.442695, %v2391_v53  ;;  %v2401_v48 = vmul.f32 1.442695, %v2392_v9  ;;  %v2403_v36 = vmul.f32 1.442695, %v2393_v34 }
 0x928   :  { %v2405_v18 = vmul.f32 1.442695, %v2394_v5  ;;  %v2407_v63 = vmul.f32 1.442695, %v2395_v11  ;;  %v2409_v19 = vmul.f32 1.442695, %v2396_v3 }
 0x929   :  { %3438 = vpow2.f32 %v2399_v45  ;;  %v2413_v10 = vmul.f32 1.442695, %v2398_v55  ;;  %v2411_v46 = vmul.f32 1.442695, %v2397_v59 }
 0x92a   :  { %3440 = vpow2.f32 %v2401_v48 }
 0x92b   :  { %3442 = vpow2.f32 %v2403_v36 }
 0x92c   :  { %3444 = vpow2.f32 %v2405_v18 }
 0x92d   :  { %3446 = vpow2.f32 %v2407_v63 }
 0x92e   :  { %3448 = vpow2.f32 %v2409_v19 }
 0x92f   :  { %3450 = vpow2.f32 %v2413_v10 }
 0x930   :  { %3452 = vpow2.f32 %v2411_v46 }
 0x933   :  { %v3439_v47 = vpop.eup %3438 }
 0x934   :  { %v3441_v51 = vpop.eup %3440  ;;  %v2416_v61 = vmul.f32 %v3439_v47, %v3834_v54 }
 0x935   :  { %v3443_v25 = vpop.eup %3442  ;;  %v3271_v52 = vpack.c.bf16 %v3441_v51, %v3439_v47  ;;  %v2417_v29 = vmul.f32 %v3441_v51, %v3880_v21 }
 0x936   :  { %v3445_v38 = vpop.eup %3444  ;;  %v2418_v1 = vmul.f32 %v3443_v25, %v3944_v39 }
 0x937   :  { %v3447_v56 = vpop.eup %3446  ;;  %3272 = vmatpush3.bf16.msra.mxu1 %v3271_v52  ;;  %v3259_v4 = vpack.c.bf16 %v2417_v29, %v2416_v61  ;;  %v2419_v8 = vmul.f32 %v3445_v38, %v4042_v12  ;;  %v3274_v15 = vpack.c.bf16 %v3445_v38, %v3443_v25 }
 0x938   :  { %v3449_v14 = vpop.eup %3448  ;;  %3273 = vmatprep.subr.bf16.mxu1 %v3536_v49  ;;  %v2420_v21 = vmul.f32 %v3447_v56, %v4090_v28 }
 0x939   :  { %3260 = vmatpush3.bf16.msra.mxu0 %v3259_v4  ;;  %v3451_v54 = vpop.eup %3450  ;;  %v3262_v26 = vpack.c.bf16 %v2419_v8, %v2418_v1  ;;  %v2421_v27 = vmul.f32 %v3449_v14, %v4136_v31  ;;  %v3277_v39 = vpack.c.bf16 %v3449_v14, %v3447_v56  ;;  %v2415_v31 = vld [vmem:[%s4231_s6] sm:$0xff] }
 0x93a   :  { %3261 = vmatprep.subr.bf16.mxu0 %v3536_v49  ;;  %v3453_v32 = vpop.eup %3452  ;;  %v2423_v13 = vmul.f32 %v3451_v54, %v4186_v40 }
 0x93b   :  { %3275 = vmatpush3.bf16.msra.mxu1 %v3274_v15  ;;  %v3265_v12 = vpack.c.bf16 %v2421_v27, %v2420_v21  ;;  %v2422_v0 = vmul.f32 %v3453_v32, %v4174_v37  ;;  %v3280_v22 = vpack.c.bf16 %v3451_v54, %v3453_v32 }
 0x93c   :  { %3276 = vmatprep.subr.bf16.mxu1 %v3536_v49 }
 0x93d   :  { %3263 = vmatpush3.bf16.msra.mxu0 %v3262_v26  ;;  %v3268_v28 = vpack.c.bf16 %v2423_v13, %v2422_v0 }
 0x93e   :  { %3264 = vmatprep.subr.bf16.mxu0 %v3536_v49 }
 0x93f   :  { %3278 = vmatpush3.bf16.msra.mxu1 %v3277_v39 }
 0x940   :  { %3279 = vmatprep.subr.bf16.mxu1 %v3536_v49 }
 0x941   :  { %3266 = vmatpush3.bf16.msra.mxu0 %v3265_v12 }
 0x942   :  { %3267 = vmatprep.subr.bf16.mxu0 %v3536_v49 }
 0x943   :  { %3281 = vmatpush3.bf16.msra.mxu1 %v3280_v22 }
 0x945   :  { %3269 = vmatpush3.bf16.msra.mxu0 %v3268_v28 }
 0x946   :  { %2680 = vmatmul.mubr.msk.f32.vlgmr.msra.gmra.mrb[16].mxu1 %vm2424_vm9, %v2415_v31 }
 0x948   :  { %2661 = vmatmul.mubr.msk.f32.vlgmr.msra.gmra.mrb[16].mxu0 %vm2424_vm9, %v2415_v31 }
 0xa19   :  { %v2564_v23 = vpop.f32.mrb[16].mxu1 }
 0xa1a   :  { %2570 = vperm.xlu1 %3357, %v2564_v23   ;;  %v2681_v37 = vpop.f32.mrb[17].mxu1 }
 0xa1b   :  { %v2494_v40 = vpop.f32.mrb[16].mxu0 }
 0xa1c   :  { %v2662_v33 = vpop.f32.mrb[17].mxu0 }
 0xa99   :  { %v2571_v2 = vpop.permute.xlu1 %2570 }
 0xa9a   :  { %3454 = vrcp.f32 %v2571_v2 }
 0xaa4   :  { %v3455_v49 = vpop.eup %3454 }
 0xaa5   :  { %v2574_v57 = vmul.f32 %v3455_v49, %v2494_v40 }
 0xaa7   :  { %2575 = vst [vmem:[#allocation10] sm:$0xff] %v2574_v57 }
 0xaa8   :  { %3512 = shalt.err (!%p3509_p6)
}
 0xaa9   :  { %s3513_s27 = scalar_lea.hbm %s4232_s7, 128 }
 0xaaa   :  { %p3514_p7 = scmp.ne.s32.totalorder %s4232_s7, %s3513_s27  ;;  %p3517_p8 = scmp.lt.u32.totalorder %s3513_s27, %s4232_s7 }
 0xaac   :  { %p3519_p9 = pnand %p3517_p8, %p3514_p7 }
 0xaae   :  { %3522 = shalt.err (!%p3519_p9)
}
 0xaaf   :  { %2585 = dma.vmem_to_hbm [thread:$0]  %s2583_s1, 128, %s4232_s7, [#allocation7]  }
 0xab0   :  { %3527 = dma.done.wait [#allocation7], 128  }
 0xab1   :  { %3528 = vsyncadd [#allocation7], 4294967168 }
 0xab2   :  { %2589 = vsyncpa [#allocation6], 1 }
 0xab3   :  { %2590 = vsyncpa [#allocation9], 1 }
 0xab4   :  { %2591 = vsyncpa [#allocation7], 1 }

</bundles_post_ra>
